<compile_context>
chip_gen: v7x
topology: tpu7x:2x2x1
jax: 0.10.0
libtpu: 0.0.40
codegen_flags: <defaults>
</compile_context>

<pallas_src>
import functools

import jax
import jax.numpy as jnp
from jax import lax
from jax.experimental import pallas as pl
from jax.experimental.pallas import tpu as pltpu

BN_EPS = 1e-5


def _round_up(x, m):
    return (x + m - 1) // m * m


def _pick_row_tile(H, W, Cm, budget_bytes=4 << 20):
    """Row tile th dividing H: prefer th % 8 == 0 and the largest tile whose
    f32 accumulator (th*W, Cm) stays under `budget_bytes`."""
    divs = [d for d in range(1, H + 1) if H % d == 0]
    # (8,128) block constraint: th*W (second-minor dim of the flat-spatial
    # output block) must be 8-aligned unless the tile covers the whole image.
    valid = [d for d in divs if d == H or (d * W) % 8 == 0]
    fits = [d for d in valid if d * W * Cm * 4 <= budget_bytes]
    aligned = [d for d in fits if d % 8 == 0]
    if aligned:
        return max(aligned)
    if fits:
        return max(fits)
    return min(valid)


def _upconv_conv_kernel(x_ref, v_ref, b_ref, y_ref, stats_ref, *,
                        tile_h, width, cin, aligned):
    """One (batch, row-tile) step: 3x3 conv with the 2x upsample folded into
    the weights, + bias; emits bf16 activations and f32 BN partial sums.

    x_ref:     (1, H+2, W+2, Cin)  zero-padded input (bf16); its block index
                                   ignores the row-tile axis, so it is DMA'd
                                   once per batch element and stays resident.
    v_ref:     (3, 3, Cin, Cm)     folded weights (bf16), grid-constant,
                                   single-buffered.  Cm = 4*Cp packs
                                   (di, dj, co) parity-major.
    b_ref:     (1, Cm)             packed conv bias (f32), grid-constant.
    y_ref:     (1, th*W, Cm)       conv + bias for this tile (bf16), flat
                                   spatial -> lane-dense, relayout-free store.
    stats_ref: (1, 1, 2, Cm)       per-tile [sum, sum_sq] partials (f32).
    """
    r = pl.program_id(1)
    row0 = r * tile_h
    if aligned:
        row0 = pl.multiple_of(row0, 8)
    cm = y_ref.shape[-1]

    x_rows = x_ref[0, pl.ds(row0, tile_h + 2), :, :]   # (th+2, W+2, Cin)

    # 9 kernel taps -> 9 MXU matmuls with K = Cin, f32 accumulation.
    acc = None
    for p in range(3):
        for q in range(3):
            lhs = x_rows[p:p + tile_h, q:q + width, :].reshape(
                tile_h * width, cin)
            part = jnp.dot(lhs, v_ref[p, q],
                           preferred_element_type=jnp.float32)
            acc = part if acc is None else acc + part

    y = acc + b_ref[...]                               # (th*W, Cm) f32
    y_ref[...] = y.astype(y_ref.dtype).reshape(1, tile_h * width, cm)

    # BatchNorm partial statistics from the f32 accumulator (before the bf16
    # cast).  NOTE: E[y^2]-E[y]^2 in f32 -- fine at these magnitudes; switch to
    # mean-shifted partials if activations ever carry a large DC offset.
    s = jnp.sum(y, axis=0, keepdims=True)              # (1, Cm)
    ss = jnp.sum(y * y, axis=0, keepdims=True)         # (1, Cm)
    stats_ref[0, 0] = jnp.concatenate([s, ss], axis=0)


def up_conv_forward(x_nchw, params):
    """Pallas implementation of up_conv.forward.  Input/output are NCHW f32."""
    w = params["w"].astype(jnp.float32)       # (3, 3, Cin, Cout)  HWIO
    b = params["b"].astype(jnp.float32)       # (Cout,)
    gamma = params["gamma"].astype(jnp.float32)
    beta = params["beta"].astype(jnp.float32)

    N, Cin, H, W = x_nchw.shape
    Cout = w.shape[-1]

    Cp = _round_up(Cout, 32)                  # packed lane dim 4*Cp % 128 == 0
    Cm = 4 * Cp
    th = _pick_row_tile(H, W, Cm)
    R = H // th

    # ---- fold (2x nearest upsample o 3x3 conv, pad=1) into one 3x3 conv on
    #      the original image with 4*Cp parity-packed output channels.
    # M[d, p, k] = 1 iff original tap k reads padded-source row offset p for
    # output parity d  (from floor((2*i + d + k - 1)/2) = i + p - 1).
    M = jnp.array([[[1., 0., 0.], [0., 1., 1.], [0., 0., 0.]],
                   [[0., 0., 0.], [1., 1., 0.], [0., 0., 1.]]], jnp.float32)
    wp = jnp.pad(w, ((0, 0), (0, 0), (0, 0), (0, Cp - Cout)))
    V = jnp.einsum("dpk,eql,klcm->pqcdem", M, M, wp)   # (3, 3, Cin, 2, 2, Cp)
    V = V.reshape(3, 3, Cin, Cm).astype(jnp.bfloat16)
    b_packed = jnp.tile(jnp.pad(b, (0, Cp - Cout)), 4).reshape(1, Cm)

    # ---- input: NCHW -> NHWC, pad=1 halo on the small pre-upsample image,
    #      bf16 for the MXU.  Channels are left unpadded (see header).
    x = jnp.transpose(x_nchw.astype(jnp.bfloat16), (0, 2, 3, 1))
    x = jnp.pad(x, ((0, 0), (1, 1), (1, 1), (0, 0)))   # (N, H+2, W+2, Cin)

    # VMEM budget from the actual block sizes (only pipelined blocks doubled).
    # TODO(synk): for very large H*W*Cin the resident padded image should be
    # replaced by a manually DMA'd (th+2)-row halo window (v7x 64 MiB / v5e
    # 16 MiB scoped budgets); unnecessary at these shapes.
    est = (2 * (H + 2) * (W + 2) * Cin * 2          # x block (double-buffered)
           + 9 * Cin * Cm * 2 + Cm * 4              # weights + bias (single)
           + 2 * (th * W * Cm * 2 + 2 * Cm * 4)     # y + stats output blocks
           + 3 * th * W * Cm * 4)                   # f32 acc + matmul temps
    vmem_limit = int(min(128 << 20, max(32 << 20, 2 * est)))

    kernel = functools.partial(_upconv_conv_kernel, tile_h=th, width=W,
                               cin=Cin, aligned=(th % 8 == 0))
    y, stats = pl.pallas_call(
        kernel,
        out_shape=(
            jax.ShapeDtypeStruct((N, H * W, Cm), jnp.bfloat16),
            jax.ShapeDtypeStruct((N, R, 2, Cm), jnp.float32),
        ),
        grid=(N, R),
        in_specs=[
            pl.BlockSpec((1, H + 2, W + 2, Cin), lambda n, r: (n, 0, 0, 0)),
            pl.BlockSpec((3, 3, Cin, Cm), lambda n, r: (0, 0, 0, 0),
                         pipeline_mode=pl.Buffered(1)),
            pl.BlockSpec((1, Cm), lambda n, r: (0, 0),
                         pipeline_mode=pl.Buffered(1)),
        ],
        out_specs=(
            pl.BlockSpec((1, th * W, Cm), lambda n, r: (n, r, 0)),
            pl.BlockSpec((1, 1, 2, Cm), lambda n, r: (n, r, 0, 0)),
        ),
        compiler_params=pltpu.CompilerParams(
            dimension_semantics=("parallel", "parallel"),
            vmem_limit_bytes=vmem_limit),
    )(x, V, b_packed)

    # ---- finish the global batch statistics (tiny per-channel math).
    tot = jnp.sum(stats, axis=(0, 1))                  # (2, Cm)
    sums = tot[0].reshape(4, Cp).sum(axis=0)[:Cout]    # combine the 4 parities
    sqs = tot[1].reshape(4, Cp).sum(axis=0)[:Cout]
    cnt = float(N) * (2 * H) * (2 * W)
    mean = sums / cnt
    var = jnp.maximum(sqs / cnt - mean * mean, 0.0)    # biased batch variance
    scale = gamma * lax.rsqrt(var + BN_EPS)
    shift = beta - mean * scale
    # TODO(synk): BatchNorm2d running_mean/running_var buffer updates (a
    # training-mode side effect) are not emitted; only the forward activation.

    # ---- fused epilogue: BN scale/shift + ReLU + depth-to-space + NCHW in one
    #      XLA pass over the bf16 intermediate.  The reshapes are pure dim
    #      splits/merges (metadata); the channel-pad slice happens before the
    #      transpose so padded channels never reach the output.
    y6 = y.reshape(N, H, W, 2, 2, Cp)[..., :Cout]      # (N, H, W, di, dj, Cout)
    z = jnp.transpose(y6, (0, 5, 1, 3, 2, 4))          # (N, Cout, H, di, W, dj)
    z = (z.astype(jnp.float32) * scale.reshape(1, Cout, 1, 1, 1, 1)
         + shift.reshape(1, Cout, 1, 1, 1, 1))
    return jnp.maximum(z, 0.0).reshape(N, Cout, 2 * H, 2 * W)


# ---------------------------- pure-JAX reference ------------------------------
def up_conv_reference(x_nchw, params):
    up = jnp.repeat(jnp.repeat(x_nchw, 2, axis=2), 2, axis=3)   # nearest 2x
    w_oihw = jnp.transpose(params["w"], (3, 2, 0, 1))
    y = lax.conv_general_dilated(
        up, w_oihw, window_strides=(1, 1), padding="SAME",
        dimension_numbers=("NCHW", "OIHW", "NCHW"))
    y = y + params["b"].reshape(1, -1, 1, 1)
    mean = jnp.mean(y, axis=(0, 2, 3), keepdims=True)
    var = jnp.mean(jnp.square(y - mean), axis=(0, 2, 3), keepdims=True)
    y = (y - mean) * lax.rsqrt(var + BN_EPS)
    y = (y * params["gamma"].reshape(1, -1, 1, 1)
         + params["beta"].reshape(1, -1, 1, 1))
    return jnp.maximum(y, 0.0)


# --------------------------------- driver -------------------------------------
def init_params(key, in_ch, out_ch):
    ks = jax.random.split(key, 3)
    scale = 1.0 / jnp.sqrt(in_ch * 9.0)
    return {
        # conv weight stored HWIO (3, 3, Cin, Cout)
        "w": jax.random.uniform(ks[0], (3, 3, in_ch, out_ch), jnp.float32,
                                -scale, scale),
        "b": jax.random.uniform(ks[1], (out_ch,), jnp.float32, -scale, scale),
        # BatchNorm affine params (PyTorch init is ones/zeros; perturb gamma a
        # bit to exercise the math)
        "gamma": 1.0 + 0.1 * jax.random.normal(ks[2], (out_ch,), jnp.float32),
        "beta": jnp.zeros((out_ch,), jnp.float32),
    }


if __name__ == "__main__":
    key = jax.random.PRNGKey(0)
    k_x, k_p = jax.random.split(key)

    N, C_IN, C_OUT, H, W = 2, 4, 8, 16, 16
    x = jax.random.normal(k_x, (N, C_IN, H, W), jnp.float32)     # NCHW input
    params = init_params(k_p, C_IN, C_OUT)

    out = jax.jit(up_conv_forward)(x, params)
    out = jax.block_until_ready(out)

    ref = up_conv_reference(x, params)
    assert out.shape == (N, C_OUT, 2 * H, 2 * W), out.shape
    max_err = float(jnp.max(jnp.abs(out - ref)))
    # bf16 MXU inputs with f32 accumulation -> ~1e-3..1e-2 deviation vs f32 ref.
    assert jnp.allclose(out, ref, atol=2e-2, rtol=2e-2), max_err
    print("KERNEL_OK")
</pallas_src>

<mosaic_0001>
module attributes {stable_mosaic.version = 11 : i64} {
  func.func @_upconv_conv_kernel(%arg0: i32, %arg1: i32, %arg2: memref<1x18x18x4xbf16, #tpu.memory_space<vmem>>, %arg3: memref<3x3x4x128xbf16, #tpu.memory_space<vmem>>, %arg4: memref<1x128xf32, #tpu.memory_space<vmem>>, %arg5: memref<1x256x128xbf16, #tpu.memory_space<vmem>>, %arg6: memref<1x1x2x128xf32, #tpu.memory_space<vmem>>) attributes {dimension_semantics = [#tpu.dimension_semantics<parallel>, #tpu.dimension_semantics<parallel>], iteration_bounds = array<i64: 2, 1>, scalar_prefetch = 0 : i64, scratch_operands = 0 : i64, tpu.core_type = #tpu.core_type<tc>, window_params = [{transform_indices = @transform_0, window_bounds = array<i64: 1, 18, 18, 4>}, {pipeline_mode = #tpu.pipeline_mode<synchronous>, transform_indices = @transform_1, window_bounds = array<i64: 3, 3, 4, 128>}, {pipeline_mode = #tpu.pipeline_mode<synchronous>, transform_indices = @transform_2, window_bounds = array<i64: 1, 128>}, {transform_indices = @transform_3, window_bounds = array<i64: 1, 256, 128>}, {transform_indices = @transform_4, window_bounds = array<i64: 1, 1, 2, 128>}]} {
    %c16_i32 = arith.constant 16 : i32
    %0 = arith.muli %arg1, %c16_i32 : i32
    %1 = tpu.assume_multiple %0, 8 : i32
    %c0 = arith.constant 0 : index
    %2 = arith.index_cast %1 : i32 to index
    %c0_0 = arith.constant 0 : index
    %c0_1 = arith.constant 0 : index
    %3 = vector.load %arg2[%c0, %2, %c0_0, %c0_1] : memref<1x18x18x4xbf16, #tpu.memory_space<vmem>>, vector<1x18x18x4xbf16>
    %4 = vector.shape_cast %3 : vector<1x18x18x4xbf16> to vector<18x18x4xbf16>
    %5 = vector.extract_strided_slice %4 {offsets = [0, 0, 0], sizes = [16, 16, 4], strides = [1, 1, 1]} : vector<18x18x4xbf16> to vector<16x16x4xbf16>
    %6 = vector.shape_cast %5 : vector<16x16x4xbf16> to vector<256x4xbf16>
    %c0_2 = arith.constant 0 : index
    %c0_3 = arith.constant 0 : index
    %c0_4 = arith.constant 0 : index
    %c0_5 = arith.constant 0 : index
    %7 = vector.load %arg3[%c0_2, %c0_3, %c0_4, %c0_5] : memref<3x3x4x128xbf16, #tpu.memory_space<vmem>>, vector<1x1x4x128xbf16>
    %8 = vector.shape_cast %7 : vector<1x1x4x128xbf16> to vector<4x128xbf16>
    %cst = arith.constant dense<0.000000e+00> : vector<256x128xf32>
    %9 = tpu.matmul %6, %8, %cst {dimension_numbers = #tpu.dot_dimension_numbers<[1], [0], [0], [1], [0, 0, 1, 1], [], []>} : vector<256x4xbf16>, vector<4x128xbf16>, vector<256x128xf32> -> vector<256x128xf32>
    %10 = vector.extract_strided_slice %4 {offsets = [0, 1, 0], sizes = [16, 16, 4], strides = [1, 1, 1]} : vector<18x18x4xbf16> to vector<16x16x4xbf16>
    %11 = vector.shape_cast %10 : vector<16x16x4xbf16> to vector<256x4xbf16>
    %c0_6 = arith.constant 0 : index
    %c1 = arith.constant 1 : index
    %c0_7 = arith.constant 0 : index
    %c0_8 = arith.constant 0 : index
    %12 = vector.load %arg3[%c0_6, %c1, %c0_7, %c0_8] : memref<3x3x4x128xbf16, #tpu.memory_space<vmem>>, vector<1x1x4x128xbf16>
    %13 = vector.shape_cast %12 : vector<1x1x4x128xbf16> to vector<4x128xbf16>
    %cst_9 = arith.constant dense<0.000000e+00> : vector<256x128xf32>
    %14 = tpu.matmul %11, %13, %cst_9 {dimension_numbers = #tpu.dot_dimension_numbers<[1], [0], [0], [1], [0, 0, 1, 1], [], []>} : vector<256x4xbf16>, vector<4x128xbf16>, vector<256x128xf32> -> vector<256x128xf32>
    %15 = arith.addf %9, %14 : vector<256x128xf32>
    %16 = vector.extract_strided_slice %4 {offsets = [0, 2, 0], sizes = [16, 16, 4], strides = [1, 1, 1]} : vector<18x18x4xbf16> to vector<16x16x4xbf16>
    %17 = vector.shape_cast %16 : vector<16x16x4xbf16> to vector<256x4xbf16>
    %c0_10 = arith.constant 0 : index
    %c2 = arith.constant 2 : index
    %c0_11 = arith.constant 0 : index
    %c0_12 = arith.constant 0 : index
    %18 = vector.load %arg3[%c0_10, %c2, %c0_11, %c0_12] : memref<3x3x4x128xbf16, #tpu.memory_space<vmem>>, vector<1x1x4x128xbf16>
    %19 = vector.shape_cast %18 : vector<1x1x4x128xbf16> to vector<4x128xbf16>
    %cst_13 = arith.constant dense<0.000000e+00> : vector<256x128xf32>
    %20 = tpu.matmul %17, %19, %cst_13 {dimension_numbers = #tpu.dot_dimension_numbers<[1], [0], [0], [1], [0, 0, 1, 1], [], []>} : vector<256x4xbf16>, vector<4x128xbf16>, vector<256x128xf32> -> vector<256x128xf32>
    %21 = arith.addf %15, %20 : vector<256x128xf32>
    %22 = vector.extract_strided_slice %4 {offsets = [1, 0, 0], sizes = [16, 16, 4], strides = [1, 1, 1]} : vector<18x18x4xbf16> to vector<16x16x4xbf16>
    %23 = vector.shape_cast %22 : vector<16x16x4xbf16> to vector<256x4xbf16>
    %c1_14 = arith.constant 1 : index
    %c0_15 = arith.constant 0 : index
    %c0_16 = arith.constant 0 : index
    %c0_17 = arith.constant 0 : index
    %24 = vector.load %arg3[%c1_14, %c0_15, %c0_16, %c0_17] : memref<3x3x4x128xbf16, #tpu.memory_space<vmem>>, vector<1x1x4x128xbf16>
    %25 = vector.shape_cast %24 : vector<1x1x4x128xbf16> to vector<4x128xbf16>
    %cst_18 = arith.constant dense<0.000000e+00> : vector<256x128xf32>
    %26 = tpu.matmul %23, %25, %cst_18 {dimension_numbers = #tpu.dot_dimension_numbers<[1], [0], [0], [1], [0, 0, 1, 1], [], []>} : vector<256x4xbf16>, vector<4x128xbf16>, vector<256x128xf32> -> vector<256x128xf32>
    %27 = arith.addf %21, %26 : vector<256x128xf32>
    %28 = vector.extract_strided_slice %4 {offsets = [1, 1, 0], sizes = [16, 16, 4], strides = [1, 1, 1]} : vector<18x18x4xbf16> to vector<16x16x4xbf16>
    %29 = vector.shape_cast %28 : vector<16x16x4xbf16> to vector<256x4xbf16>
    %c1_19 = arith.constant 1 : index
    %c1_20 = arith.constant 1 : index
    %c0_21 = arith.constant 0 : index
    %c0_22 = arith.constant 0 : index
    %30 = vector.load %arg3[%c1_19, %c1_20, %c0_21, %c0_22] : memref<3x3x4x128xbf16, #tpu.memory_space<vmem>>, vector<1x1x4x128xbf16>
    %31 = vector.shape_cast %30 : vector<1x1x4x128xbf16> to vector<4x128xbf16>
    %cst_23 = arith.constant dense<0.000000e+00> : vector<256x128xf32>
    %32 = tpu.matmul %29, %31, %cst_23 {dimension_numbers = #tpu.dot_dimension_numbers<[1], [0], [0], [1], [0, 0, 1, 1], [], []>} : vector<256x4xbf16>, vector<4x128xbf16>, vector<256x128xf32> -> vector<256x128xf32>
    %33 = arith.addf %27, %32 : vector<256x128xf32>
    %34 = vector.extract_strided_slice %4 {offsets = [1, 2, 0], sizes = [16, 16, 4], strides = [1, 1, 1]} : vector<18x18x4xbf16> to vector<16x16x4xbf16>
    %35 = vector.shape_cast %34 : vector<16x16x4xbf16> to vector<256x4xbf16>
    %c1_24 = arith.constant 1 : index
    %c2_25 = arith.constant 2 : index
    %c0_26 = arith.constant 0 : index
    %c0_27 = arith.constant 0 : index
    %36 = vector.load %arg3[%c1_24, %c2_25, %c0_26, %c0_27] : memref<3x3x4x128xbf16, #tpu.memory_space<vmem>>, vector<1x1x4x128xbf16>
    %37 = vector.shape_cast %36 : vector<1x1x4x128xbf16> to vector<4x128xbf16>
    %cst_28 = arith.constant dense<0.000000e+00> : vector<256x128xf32>
    %38 = tpu.matmul %35, %37, %cst_28 {dimension_numbers = #tpu.dot_dimension_numbers<[1], [0], [0], [1], [0, 0, 1, 1], [], []>} : vector<256x4xbf16>, vector<4x128xbf16>, vector<256x128xf32> -> vector<256x128xf32>
    %39 = arith.addf %33, %38 : vector<256x128xf32>
    %40 = vector.extract_strided_slice %4 {offsets = [2, 0, 0], sizes = [16, 16, 4], strides = [1, 1, 1]} : vector<18x18x4xbf16> to vector<16x16x4xbf16>
    %41 = vector.shape_cast %40 : vector<16x16x4xbf16> to vector<256x4xbf16>
    %c2_29 = arith.constant 2 : index
    %c0_30 = arith.constant 0 : index
    %c0_31 = arith.constant 0 : index
    %c0_32 = arith.constant 0 : index
    %42 = vector.load %arg3[%c2_29, %c0_30, %c0_31, %c0_32] : memref<3x3x4x128xbf16, #tpu.memory_space<vmem>>, vector<1x1x4x128xbf16>
    %43 = vector.shape_cast %42 : vector<1x1x4x128xbf16> to vector<4x128xbf16>
    %cst_33 = arith.constant dense<0.000000e+00> : vector<256x128xf32>
    %44 = tpu.matmul %41, %43, %cst_33 {dimension_numbers = #tpu.dot_dimension_numbers<[1], [0], [0], [1], [0, 0, 1, 1], [], []>} : vector<256x4xbf16>, vector<4x128xbf16>, vector<256x128xf32> -> vector<256x128xf32>
    %45 = arith.addf %39, %44 : vector<256x128xf32>
    %46 = vector.extract_strided_slice %4 {offsets = [2, 1, 0], sizes = [16, 16, 4], strides = [1, 1, 1]} : vector<18x18x4xbf16> to vector<16x16x4xbf16>
    %47 = vector.shape_cast %46 : vector<16x16x4xbf16> to vector<256x4xbf16>
    %c2_34 = arith.constant 2 : index
    %c1_35 = arith.constant 1 : index
    %c0_36 = arith.constant 0 : index
    %c0_37 = arith.constant 0 : index
    %48 = vector.load %arg3[%c2_34, %c1_35, %c0_36, %c0_37] : memref<3x3x4x128xbf16, #tpu.memory_space<vmem>>, vector<1x1x4x128xbf16>
    %49 = vector.shape_cast %48 : vector<1x1x4x128xbf16> to vector<4x128xbf16>
    %cst_38 = arith.constant dense<0.000000e+00> : vector<256x128xf32>
    %50 = tpu.matmul %47, %49, %cst_38 {dimension_numbers = #tpu.dot_dimension_numbers<[1], [0], [0], [1], [0, 0, 1, 1], [], []>} : vector<256x4xbf16>, vector<4x128xbf16>, vector<256x128xf32> -> vector<256x128xf32>
    %51 = arith.addf %45, %50 : vector<256x128xf32>
    %52 = vector.extract_strided_slice %4 {offsets = [2, 2, 0], sizes = [16, 16, 4], strides = [1, 1, 1]} : vector<18x18x4xbf16> to vector<16x16x4xbf16>
    %53 = vector.shape_cast %52 : vector<16x16x4xbf16> to vector<256x4xbf16>
    %c2_39 = arith.constant 2 : index
    %c2_40 = arith.constant 2 : index
    %c0_41 = arith.constant 0 : index
    %c0_42 = arith.constant 0 : index
    %54 = vector.load %arg3[%c2_39, %c2_40, %c0_41, %c0_42] : memref<3x3x4x128xbf16, #tpu.memory_space<vmem>>, vector<1x1x4x128xbf16>
    %55 = vector.shape_cast %54 : vector<1x1x4x128xbf16> to vector<4x128xbf16>
    %cst_43 = arith.constant dense<0.000000e+00> : vector<256x128xf32>
    %56 = tpu.matmul %53, %55, %cst_43 {dimension_numbers = #tpu.dot_dimension_numbers<[1], [0], [0], [1], [0, 0, 1, 1], [], []>} : vector<256x4xbf16>, vector<4x128xbf16>, vector<256x128xf32> -> vector<256x128xf32>
    %57 = arith.addf %51, %56 : vector<256x128xf32>
    %c0_44 = arith.constant 0 : index
    %c0_45 = arith.constant 0 : index
    %58 = vector.load %arg4[%c0_44, %c0_45] : memref<1x128xf32, #tpu.memory_space<vmem>>, vector<1x128xf32>
    %59 = vector.broadcast %58 : vector<1x128xf32> to vector<256x128xf32>
    %60 = arith.addf %57, %59 : vector<256x128xf32>
    %61 = arith.truncf %60 : vector<256x128xf32> to vector<256x128xbf16>
    %62 = vector.shape_cast %61 : vector<256x128xbf16> to vector<1x256x128xbf16>
    %c0_46 = arith.constant 0 : index
    %c0_47 = arith.constant 0 : index
    %c0_48 = arith.constant 0 : index
    %63 = vector.load %arg5[%c0_46, %c0_47, %c0_48] : memref<1x256x128xbf16, #tpu.memory_space<vmem>>, vector<1x256x128xbf16>
    tpu.vector_store %arg5[%c0_46, %c0_47, %c0_48], %62 {strides = array<i32>} : memref<1x256x128xbf16, #tpu.memory_space<vmem>>, vector<1x256x128xbf16>,
    %cst_49 = arith.constant dense<0.000000e+00> : vector<128xf32>
    %64 = vector.multi_reduction <add>, %60, %cst_49 [0] : vector<256x128xf32> to vector<128xf32>
    %65 = vector.shape_cast %64 : vector<128xf32> to vector<1x128xf32>
    %66 = arith.mulf %60, %60 : vector<256x128xf32>
    %cst_50 = arith.constant dense<0.000000e+00> : vector<128xf32>
    %67 = vector.multi_reduction <add>, %66, %cst_50 [0] : vector<256x128xf32> to vector<128xf32>
    %68 = vector.shape_cast %67 : vector<128xf32> to vector<1x128xf32>
    %69 = tpu.concatenate %65, %68 in 0 : vector<1x128xf32>, vector<1x128xf32> -> vector<2x128xf32>
    %c0_51 = arith.constant 0 : index
    %c0_52 = arith.constant 0 : index
    %c0_53 = arith.constant 0 : index
    %c0_54 = arith.constant 0 : index
    %70 = vector.load %arg6[%c0_51, %c0_52, %c0_53, %c0_54] : memref<1x1x2x128xf32, #tpu.memory_space<vmem>>, vector<1x1x2x128xf32>
    %71 = vector.shape_cast %70 : vector<1x1x2x128xf32> to vector<2x128xf32>
    %72 = vector.shape_cast %69 : vector<2x128xf32> to vector<1x1x2x128xf32>
    tpu.vector_store %arg6[%c0_51, %c0_52, %c0_53, %c0_54], %72 {strides = array<i32>} : memref<1x1x2x128xf32, #tpu.memory_space<vmem>>, vector<1x1x2x128xf32>,
    return
  }
  func.func @transform_0(%arg0: i32, %arg1: i32) -> (i32, i32, i32, i32) {
    %c0_i32 = arith.constant 0 : i32
    %c0_i32_0 = arith.constant 0 : i32
    %c0_i32_1 = arith.constant 0 : i32
    %c0_i32_2 = arith.constant 0 : i32
    return %arg0, %c0_i32, %c0_i32_0, %c0_i32_1 : i32, i32, i32, i32
  }
  func.func @transform_1(%arg0: i32, %arg1: i32) -> (i32, i32, i32, i32) {
    %c0_i32 = arith.constant 0 : i32
    %c0_i32_0 = arith.constant 0 : i32
    %c0_i32_1 = arith.constant 0 : i32
    %c0_i32_2 = arith.constant 0 : i32
    %c0_i32_3 = arith.constant 0 : i32
    return %c0_i32, %c0_i32_0, %c0_i32_1, %c0_i32_2 : i32, i32, i32, i32
  }
  func.func @transform_2(%arg0: i32, %arg1: i32) -> (i32, i32) {
    %c0_i32 = arith.constant 0 : i32
    %c0_i32_0 = arith.constant 0 : i32
    %c0_i32_1 = arith.constant 0 : i32
    return %c0_i32, %c0_i32_0 : i32, i32
  }
  func.func @transform_3(%arg0: i32, %arg1: i32) -> (i32, i32, i32) {
    %c0_i32 = arith.constant 0 : i32
    %c0_i32_0 = arith.constant 0 : i32
    return %arg0, %arg1, %c0_i32 : i32, i32, i32
  }
  func.func @transform_4(%arg0: i32, %arg1: i32) -> (i32, i32, i32, i32) {
    %c0_i32 = arith.constant 0 : i32
    %c0_i32_0 = arith.constant 0 : i32
    %c0_i32_1 = arith.constant 0 : i32
    return %arg0, %arg1, %c0_i32, %c0_i32_0 : i32, i32, i32, i32
  }
}

</mosaic_0001>

<bundles_post_ra>
// kernel: tile.8
= control target key start
LH: loop header
LB: loop body
LE: loop exit
PB: predicated region body
PF: predicated region fallthrough
CT: control target
= control target key end

     0   :  { %s22_s0 = inlined_call_operand.vmem [shape: f32[32], index: 0, kind: input, shape index: {}]   ;;  %s23_s1 = inlined_call_operand.vmem [shape: f32[4,32], index: 1, kind: output, shape index: {}]  }
   0x1   :  { %v4_v0 = vld [vmem:[%s22_s0] ss:$0 sm:$0xff] }
   0x2   :  { %5 = vst [vmem:[%s23_s1] sm:$0xf] %v4_v0 }

// kernel: tile.9
= control target key start
LH: loop header
LB: loop body
LE: loop exit
PB: predicated region body
PF: predicated region fallthrough
CT: control target
= control target key end

     0   :  { %vm7_vm0 = vcmask 261120   ;;  %s37_s8 = smov 32   ;;  %s38_s9 = smov 64   ;;  %vm13_vm1 = vcmask 1048320   ;;  %vm19_vm2 = vcmask 785920   ;;  %vm25_vm3 = vcmask 523520   ;;  %s55_s0 = inlined_call_operand.vmem [shape: f32[4,32], index: 0, kind: input, shape index: {}]   ;;  %s56_s1 = inlined_call_operand.vmem [shape: f32[1,128], index: 1, kind: output, shape index: {}]  }
   0x1   :  { %v4_v0 = vld [vmem:[%s55_s0] sm:$0xf]  ;;  %s36_s0 = smov 96  }
   0x2   :  { %5 = vst [vmem:[#allocation1] sm:$0xf] %v4_v0 }
   0x9   :  { %v10_v1 = vld [vmem:[#allocation1 + $0x3] sm:$0x1]   ;;  %v22_v2 = vld [vmem:[#allocation1 + $0x1] sm:$0x1]   ;;  %v6_v3 = vld [vmem:[#allocation1] sm:$0x1]  }
   0xa   :  { %11 = vrot.lane.b32.xlu0 %v10_v1, %s36_s0  ;;  %23 = vrot.lane.b32.xlu1 %v22_v2, %s37_s8  ;;  %v16_v4 = vld [vmem:[#allocation1 + $0x2] sm:$0x1]   ;;  %8 = vst.msk [vmem:[#allocation0] sm:$0x1] %vm7_vm0, %v6_v3  }
   0xe   :  { %17 = vrot.lane.b32.xlu0 %v16_v4, %s38_s9 }
  0x7c   :  { %v12_v5 = vpop.permute.xlu0 %11   ;;  %v24_v6 = vpop.permute.xlu1 %23  }
  0x7d   :  { %14 = vst.msk [vmem:[#allocation0] sm:$0x1] %vm13_vm1, %v12_v5  }
  0x80   :  { %v18_v7 = vpop.permute.xlu0 %17  }
  0x81   :  { %20 = vst.msk [vmem:[#allocation0] sm:$0x1] %vm19_vm2, %v18_v7  }
  0x82   :  { %26 = vst.msk [vmem:[#allocation0] sm:$0x1] %vm25_vm3, %v24_v6  }
  0x89   :  { %v30_v8 = vld [vmem:[#allocation0] sm:$0x1] }
  0x8a   :  { %32 = vst [vmem:[%s56_s1] sm:$0x1] %v30_v8 }

// kernel: squeeze.2
= control target key start
LH: loop header
LB: loop body
LE: loop exit
PB: predicated region body
PF: predicated region fallthrough
CT: control target
= control target key end

     0   :  { %s37_s8 = smov 32   ;;  %vm7_vm0 = vcmask 261120   ;;  %s38_s9 = smov 64   ;;  %s55_s0 = inlined_call_operand.vmem [shape: f32[128], index: 0, kind: input, shape index: {}]   ;;  %s56_s1 = inlined_call_operand.vmem [shape: f32[4,32], index: 1, kind: output, shape index: {}]  }
   0x1   :  { %v4_v0 = vld [vmem:[%s55_s0] sm:$0x1]  ;;  %s36_s0 = smov 96  }
   0x2   :  { %5 = vst [vmem:[#allocation1] sm:$0x1] %v4_v0 }
   0x9   :  { %v9_v1 = vld [vmem:[#allocation1] sm:$0x1]  }
   0xa   :  { %v21_v2 = vld [vmem:[#allocation1] sm:$0x1]   ;;  %10 = vrot.lane.b32.xlu0 %v9_v1, %s36_s0 }
   0xb   :  { %22 = vrot.lane.b32.xlu1 %v21_v2, %s37_s8  ;;  %v6_v3 = vld [vmem:[#allocation1] sm:$0x1]  }
   0xc   :  { %v15_v4 = vld [vmem:[#allocation1] sm:$0x1]   ;;  %8 = vst.msk [vmem:[#allocation0] sm:$0x1] %vm7_vm0, %v6_v3  }
   0xe   :  { %16 = vrot.lane.b32.xlu0 %v15_v4, %s38_s9 }
  0x7c   :  { %v11_v5 = vpop.permute.xlu0 %10  }
  0x7d   :  { %v23_v6 = vpop.permute.xlu1 %22   ;;  %14 = vst.msk [vmem:[#allocation0 + $0x1] sm:$0x1] %vm7_vm0, %v11_v5  }
  0x7e   :  { %26 = vst.msk [vmem:[#allocation0 + $0x3] sm:$0x1] %vm7_vm0, %v23_v6  }
  0x80   :  { %v17_v7 = vpop.permute.xlu0 %16  }
  0x81   :  { %20 = vst.msk [vmem:[#allocation0 + $0x2] sm:$0x1] %vm7_vm0, %v17_v7  }
  0x88   :  { %v30_v8 = vld [vmem:[#allocation0] sm:$0xf] }
  0x89   :  { %32 = vst [vmem:[%s56_s1] sm:$0xf] %v30_v8 }

// kernel: up_conv_forward.1
= control target key start
LH: loop header
LB: loop body
LE: loop exit
PB: predicated region body
PF: predicated region fallthrough
CT: control target
= control target key end

     0   :  { %s4611_s15 = smov 0   ;;  %s4613_s16 = smov 0   ;;  %s5677_s0 = inlined_call_operand.vmem [shape: bf16[2,18,18,4], index: 0, kind: input, shape index: {}]   ;;  %s5678_s1 = inlined_call_operand.vmem [shape: bf16[3,3,4,128], index: 1, kind: input, shape index: {}]   ;;  %s5679_s2 = inlined_call_operand.vmem [shape: f32[1,128], index: 2, kind: input, shape index: {}]   ;;  %s5680_s3 = inlined_call_operand.vmem [shape: bf16[2,256,128], index: 3, kind: output, shape index: {0}]   ;;  %s5681_s4 = inlined_call_operand.vmem [shape: f32[2,1,2,128], index: 4, kind: output, shape index: {1}]  }
   0x1   :  { %s4615_s17 = smov 0  }
   0x2 LB: > { %s27_s18 = sadd.s32 1, %s4580_s16  ;;  %p3396_p0 = scmp.ge.s32.totalorder %s4584_s17, 1  ;;  %s4584_s17 = sphi %s4615_s17, %s15_s17   ;;  %s4580_s16 = sphi %s4613_s16, %s5760_s16   ;;  %s4576_s15 = sphi %s4611_s15, %s5759_s15  }
   0x3   : > { %p29_p1 = scmp.ge.s32.totalorder %s27_s18, 2  ;;  %p181_p2 = scmp.lt.s32.totalorder %s4584_s17, 3 }
   0x5   : > { %s5762_s18 = smov (%p29_p1, %s27_s18), 0  ;;  %p182_p3 = pnand %p3396_p0, %p181_p2 }
   0x7   : > { %185 = sbr.rel (%p182_p3) target bundleno = 573 (0x23d), region = 32 }
   0xe   : > { %v3401_v0 = vld [vmem:[%s5678_s1 + $0x2] sm:$0x3]  ;;  %vm786_vm0 = vcmask 1041408   ;;  %v3533_v1 = vld [vmem:[%s5678_s1 + $0x8] sm:$0x3]  ;;  %p218_p4 = scmp.lt.s32.totalorder %s4576_s15, 1 }
   0xf   : > { %4505 = vmatprep.subr.msk.bf16.mxu1 %vm786_vm0, %v3401_v0  ;;  %4509 = vmatprep.subr.msk.bf16.mxu0 %vm786_vm0, %v3533_v1  ;;  %v788_v2 = vsel %vm786_vm0, %v3401_v0, 0  ;;  %v4639_v3 = vsel %vm786_vm0, %v3533_v1, 0  ;;  %v299_v4 = vld [vmem:[%s5678_s1] sm:$0x3]  ;;  %v3552_v5 = vld [vmem:[%s5678_s1 + $0xa] sm:$0x3] }
  0x10   : > { %5713 = vst [vmem:[#allocation2_spill] sm:$0xff] %v4639_v3  ;;  %3942 = vmatpush3.bf16.msra.mxu1 %v788_v2  ;;  %4078 = vmatpush3.bf16.msra.mxu0 %v4639_v3  ;;  %s5764_s15 = smov (!%p218_p4, %s4576_s15), 1  ;;  %vm300_vm1 = vsmask.f32 3328  ;;  %vm301_vm2 = vsmask.f32 7440 }
  0x11   : > { %4506 = vmatprep.subr.msk.bf16.mxu1 %vm786_vm0, %v299_v4  ;;  %4511 = vmatprep.subr.msk.bf16.mxu0 %vm786_vm0, %v3552_v5  ;;  %s4515_s27 = smul.u32 216, %s5764_s15  ;;  %v4659_v6 = vsel %vm786_vm0, %v299_v4, 0  ;;  %v4662_v7 = vsel %vm786_vm0, %v3552_v5, 0  ;;  %v4667_v8 = vld [vmem:[%s5678_s1 + $0xc] sm:$0x3]  ;;  %vm737_vm3 = vcmask 31744   ;;  %vm4703_vm4 = vmor %vm300_vm1, %vm301_vm2 }
  0x12   : > { %v4691_v20 = vsel %vm786_vm0, %v4667_v8, 0  ;;  %vm1259_vm5 = vcmask 1042432   ;;  %vm1260_vm6 = vcmask 1046532   ;;  %s3660_s23 = sshll.u32 %s5764_s15, 7  ;;  %vm3265_vm8 = vcmask 1040384  }
  0x13   : > { %s4656_s30 = scalar_lea.vmem %s5677_s0, %s4515_s27  ;;  %vm4884_vm7 = vmor %vm1259_vm5, %vm1260_vm6  ;;  %s5610_s26 = scalar_lea.vmem %s5680_s3, %s3660_s23 }
  0x14   : > { %v4670_v9 = vld [vmem:[%s4656_s30] sm:$0xf]  ;;  %v4673_v10 = vld [vmem:[%s4656_s30 + $0x4] sm:$0xf]  ;;  %v247_v11 = vld [vmem:[%s4656_s30 + $0x8] sm:$0x1] }
  0x15   : > { %v304_v12 = vshrl.u32 %v4670_v9, 16  ;;  %v307_v13 = vshll.u32 %v4670_v9, 16  ;;  %v313_v14 = vshll.u32 %v4673_v10, 16  ;;  %v317_v15 = vshrl.u32 %v4673_v10, 16  ;;  %v4681_v16 = vld [vmem:[%s4656_s30 + $0xc] sm:$0xf] }
  0x16   : > { %v323_v17 = vshll.u32 %v247_v11, 16  ;;  %v4684_v18 = vld [vmem:[%s4656_s30 + $0x10] sm:$0xf]  ;;  %v4687_v19 = vld [vmem:[%s4656_s30 + $0x14] sm:$0x1]  ;;  %v328_v26 = vshrl.u32 %v4681_v16, 16 }
  0x17   : > { %v306_v21 = vrot.slane %v304_v12, 4  ;;  %v309_v22 = vrot.slane %v307_v13, 5  ;;  %v315_v23 = vrot.slane %v313_v14, 5  ;;  %v319_v24 = vrot.slane %v317_v15, 4  ;;  %v4699_v33 = vld [vmem:[%s4656_s30 + $0x18] sm:$0xf] }
  0x18   : > { %v325_v25 = vrot.slane %v323_v17, 5  ;;  %v331_v27 = vshll.u32 %v4681_v16, 16  ;;  %v337_v28 = vshll.u32 %v4684_v18, 16  ;;  %v341_v31 = vshrl.u32 %v4684_v18, 16  ;;  %v4712_v39 = vld [vmem:[%s4656_s30 + $0x1c] sm:$0xf] }
  0x19   : > { %v310_v29 = vor.u32 %v309_v22, %v306_v21  ;;  %v320_v30 = vor.u32 %v319_v24, %v315_v23  ;;  %v347_v32 = vshll.u32 %v4687_v19, 16  ;;  %v330_v35 = vrot.slane %v328_v26, 4  ;;  %v4716_v46 = vld [vmem:[%s4656_s30 + $0x20] sm:$0x1]  ;;  %v4726_v57 = vld [vmem:[%s4656_s30 + $0x24] sm:$0xf] }
  0x1a   : > { %v333_v36 = vrot.slane %v331_v27, 5  ;;  %v339_v37 = vrot.slane %v337_v28, 5  ;;  %v4709_v38 = vcombine.low %v4681_v16, %v4684_v18  ;;  %v343_v42 = vrot.slane %v341_v31, 4  ;;  %v4731_v62 = vld [vmem:[%s4656_s30 + $0x28] sm:$0xf]  ;;  %s3400_s27 = sshll.u32 %s5764_s15, 1 }
  0x1b   : > { %v311_v40 = vrot.slane %v310_v29, 4  ;;  %v321_v41 = vrot.slane %v320_v30, 4  ;;  %v349_v43 = vrot.slane %v347_v32, 5  ;;  %v1274_v45 = vrot.slane %v4687_v19, 5  ;;  %v4739_v4 = vld [vmem:[%s4656_s30 + $0x2c] sm:$0x1] }
  0x1c   : > { %v334_v44 = vor.u32 %v333_v36, %v330_v35  ;;  %v352_v47 = vshrl.u32 %v4699_v33, 16  ;;  %v355_v48 = vshll.u32 %v4699_v33, 16  ;;  %v344_v51 = vor.u32 %v343_v42, %v339_v37  ;;  %v4745_v14 = vld [vmem:[%s4656_s30 + $0x30] sm:$0xf]  ;;  %v4757_v28 = vld [vmem:[%s4656_s30 + $0x34] sm:$0xf] }
  0x1d   : > { %v316_v49 = vsel %vm4703_vm4, %v311_v40, %v315_v23  ;;  %v326_v50 = vsel %vm4703_vm4, %v321_v41, %v325_v25  ;;  %v361_v52 = vshll.u32 %v4712_v39, 16  ;;  %v365_v60 = vshrl.u32 %v4712_v39, 16  ;;  %v4752_v23 = vld [vmem:[%s5678_s1 + $0x4] sm:$0x3]  ;;  %v4764_v32 = vld [vmem:[%s4656_s30 + $0x38] sm:$0x1] }
  0x1e   : > { %v3402_v53 = vcombine.low %v316_v49, %v326_v50  ;;  %v335_v54 = vrot.slane %v334_v44, 4  ;;  %v354_v55 = vrot.slane %v352_v47, 4  ;;  %v357_v56 = vrot.slane %v355_v48, 5  ;;  %v4772_v48 = vld [vmem:[%s4656_s30 + $0x3c] sm:$0xf] }
  0x1f   : > { %v345_v58 = vrot.slane %v344_v51, 4  ;;  %v363_v59 = vrot.slane %v361_v52, 5  ;;  %v371_v61 = vshll.u32 %v4716_v46, 16  ;;  %v1278_v1 = vrot.slane %v4712_v39, 5  ;;  %v4780_v52 = vld [vmem:[%s4656_s30 + $0x40] sm:$0xf] }
  0x20   : > { %3943 = vmatprep.mubr.msk.bf16.mxu1 %vm737_vm3, %v3402_v53  ;;  %v340_v63 = vsel %vm4703_vm4, %v335_v54, %v339_v37  ;;  %v358_v0 = vor.u32 %v357_v56, %v354_v55  ;;  %v1281_v2 = vrot.slane %v4716_v46, 5  ;;  %v367_v11 = vrot.slane %v365_v60, 4 }
  0x21   : > { %v350_v5 = vsel %vm4703_vm4, %v345_v58, %v349_v43  ;;  %v373_v12 = vrot.slane %v371_v61, 5  ;;  %v376_v13 = vshrl.u32 %v4726_v57, 16  ;;  %v379_v21 = vshll.u32 %v4726_v57, 16 }
  0x22   : > { %v3403_v15 = vcombine.low %v340_v63, %v350_v5  ;;  %v359_v17 = vrot.slane %v358_v0, 4  ;;  %v385_v22 = vshll.u32 %v4731_v62, 16  ;;  %v368_v24 = vor.u32 %v367_v11, %v363_v59  ;;  %v4792_v5 = vld [vmem:[%s4656_s30 + $0x44] sm:$0x1] }
  0x23   : > { %v378_v25 = vrot.slane %v376_v13, 4  ;;  %v389_v26 = vshrl.u32 %v4731_v62, 16  ;;  %v395_v27 = vshll.u32 %v4739_v4, 16  ;;  %v381_v30 = vrot.slane %v379_v21, 5  ;;  %v4797_v13 = vld [vmem:[%s4656_s30 + $0x48] sm:$0xf] }
  0x24   : > { %4079 = vmatprep.mubr.msk.bf16.mxu0 %vm737_vm3, %v3403_v15  ;;  %3944 = vmatmul.mubr.msk.bf16.vlgmr.msra.gmra.mrb[0].mxu1 %vm737_vm3, %v3403_v15  ;;  %v364_v29 = vsel %vm4703_vm4, %v359_v17, %v363_v59  ;;  %v387_v31 = vrot.slane %v385_v22, 5  ;;  %v400_v35 = vshrl.u32 %v4745_v14, 16  ;;  %v369_v36 = vrot.slane %v368_v24, 4  ;;  %v4804_v24 = vld [vmem:[%s4656_s30 + $0x4c] sm:$0xf] }
  0x25   : > { %3976 = vmatpush3.bf16.msra.mxu1 %v4659_v6  ;;  %v391_v37 = vrot.slane %v389_v26, 4  ;;  %v397_v40 = vrot.slane %v395_v27, 5  ;;  %v403_v41 = vshll.u32 %v4745_v14, 16  ;;  %v382_v42 = vor.u32 %v381_v30, %v378_v25 }
  0x26   : > { %v402_v43 = vrot.slane %v400_v35, 4  ;;  %v409_v44 = vshll.u32 %v4757_v28, 16  ;;  %v413_v47 = vshrl.u32 %v4757_v28, 16  ;;  %4507 = vmatprep.subr.msk.bf16.mxu1 %vm786_vm0, %v4752_v23  ;;  %v374_v49 = vsel %vm4703_vm4, %v369_v36, %v373_v12 }
  0x27   : > { %v392_v6 = vor.u32 %v391_v37, %v387_v31  ;;  %v405_v50 = vrot.slane %v403_v41, 5  ;;  %v419_v51 = vshll.u32 %v4764_v32, 16  ;;  %v4782_v53 = vcombine.low %v364_v29, %v374_v49 }
  0x28   : > { %v383_v54 = vrot.slane %v382_v42, 4  ;;  %v411_v55 = vrot.slane %v409_v44, 5  ;;  %v415_v56 = vrot.slane %v413_v47, 4  ;;  %v424_v61 = vshrl.u32 %v4772_v48, 16  ;;  %v4826_v42 = vld [vmem:[%s4656_s30 + $0x54] sm:$0xf] }
  0x29   : > { %5716 = vst [vmem:[#allocation3_spill] sm:$0xff] %v4782_v53  ;;  %v393_v58 = vrot.slane %v392_v6, 4  ;;  %v406_v59 = vor.u32 %v405_v50, %v402_v43  ;;  %v421_v60 = vrot.slane %v419_v51, 5  ;;  %4080 = vmatmul.mubr.msk.bf16.vlgmr.msra.gmra.mrb[0].mxu0 %vm737_vm3, %v4782_v53  ;;  %3947 = vmatprep.mubr.msk.bf16.mxu1 %vm737_vm3, %v4782_v53  ;;  %v427_v11 = vshll.u32 %v4772_v48, 16  ;;  %5718 = vst [vmem:[#allocation5_spill] sm:$0xff] %v4826_v42 }
  0x2a   : > { %v388_v63 = vsel %vm4703_vm4, %v383_v54, %v387_v31  ;;  %v416_v0 = vor.u32 %v415_v56, %v411_v55  ;;  %v433_v12 = vshll.u32 %v4780_v52, 16  ;;  %4112 = vmatpush3.bf16.msra.mxu0 %v4662_v7  ;;  %v426_v21 = vrot.slane %v424_v61, 4  ;;  %v4831_v6 = vld [vmem:[%s4656_s30 + $0x58] sm:$0xf] }
  0x2b   : > { %v398_v15 = vsel %vm4703_vm4, %v393_v58, %v397_v40  ;;  %v407_v17 = vrot.slane %v406_v59, 4  ;;  %v437_v22 = vshrl.u32 %v4780_v52, 16  ;;  %v429_v27 = vrot.slane %v427_v11, 5  ;;  %4512 = vmatprep.subr.msk.bf16.mxu0 %vm786_vm0, %v4667_v8  ;;  %v4821_v8 = vld [vmem:[%s4656_s30 + $0x50] sm:$0x1] }
  0x2c   : > { %v4806_v25 = vcombine.low %v388_v63, %v398_v15  ;;  %v417_v26 = vrot.slane %v416_v0, 4  ;;  %v435_v29 = vrot.slane %v433_v12, 5  ;;  %v443_v31 = vshll.u32 %v4792_v5, 16  ;;  %v4844_v11 = vld [vmem:[%s4656_s30 + $0x5c] sm:$0x1] }
  0x2d   : > { %v412_v7 = vsel %vm4703_vm4, %v407_v17, %v411_v55  ;;  %v439_v30 = vrot.slane %v437_v22, 4  ;;  %v448_v35 = vshrl.u32 %v4797_v13, 16  ;;  %v430_v37 = vor.u32 %v429_v27, %v426_v21  ;;  %v4848_v15 = vld [vmem:[%s4656_s30 + $0x60] sm:$0xf]  ;;  %v4853_v27 = vld [vmem:[%s4656_s30 + $0x64] sm:$0xf] }
  0x2e   : > { %5717 = vst [vmem:[#allocation4_spill] sm:$0xff] %v4806_v25  ;;  %4083 = vmatprep.mubr.msk.bf16.mxu0 %vm737_vm3, %v4806_v25  ;;  %3948 = vmatmul.mubr.msk.bf16.gmra.mrb[4].mxu1 %vm737_vm3, %v4806_v25  ;;  %v422_v36 = vsel %vm4703_vm4, %v417_v26, %v421_v60  ;;  %v451_v40 = vshll.u32 %v4797_v13, 16  ;;  %v457_v41 = vshll.u32 %v4804_v24, 16  ;;  %v445_v47 = vrot.slane %v443_v31, 5  ;;  %v5065_v25 = vld [vmem:[%s4656_s30 + $0xa8] sm:$0xf] }
  0x2f   : > { %v4828_v43 = vcombine.low %v412_v7, %v422_v36  ;;  %v440_v44 = vor.u32 %v439_v30, %v435_v29  ;;  %v450_v49 = vrot.slane %v448_v35, 4  ;;  %v431_v50 = vrot.slane %v430_v37, 4 }
  0x30   : > { %v453_v51 = vrot.slane %v451_v40, 5  ;;  %v459_v54 = vrot.slane %v457_v41, 5  ;;  %v461_v55 = vshrl.u32 %v4804_v24, 16  ;;  %v467_v58 = vshll.u32 %v4821_v8, 16 }
  0x31   : > { %5719 = vst [vmem:[#allocation6_spill] sm:$0xff] %v4828_v43  ;;  %3951 = vmatprep.mubr.msk.bf16.mxu1 %vm737_vm3, %v4828_v43  ;;  %v441_v56 = vrot.slane %v440_v44, 4  ;;  %v472_v59 = vshrl.u32 %v4826_v42, 16  ;;  %v475_v60 = vshll.u32 %v4826_v42, 16  ;;  %4084 = vmatmul.mubr.msk.bf16.gmra.mrb[4].mxu0 %vm737_vm3, %v4828_v43  ;;  %v436_v61 = vsel %vm4703_vm4, %v431_v50, %v435_v29 }
  0x32   : > { %v454_v63 = vor.u32 %v453_v51, %v450_v49  ;;  %v463_v0 = vrot.slane %v461_v55, 4  ;;  %v481_v12 = vshll.u32 %v4831_v6, 16  ;;  %v469_v21 = vrot.slane %v467_v58, 5 }
  0x33   : > { %v446_v17 = vsel %vm4703_vm4, %v441_v56, %v445_v47  ;;  %v474_v22 = vrot.slane %v472_v59, 4  ;;  %v477_v26 = vrot.slane %v475_v60, 5  ;;  %v485_v36 = vshrl.u32 %v4831_v6, 16  ;;  %v4867_v47 = vld [vmem:[%s4656_s30 + $0x68] sm:$0x1] }
  0x34   : > { %v4855_v7 = vcombine.low %v436_v61, %v446_v17  ;;  %v455_v29 = vrot.slane %v454_v63, 4  ;;  %v464_v30 = vor.u32 %v463_v0, %v459_v54  ;;  %v483_v31 = vrot.slane %v481_v12, 5 }
  0x35   : > { %v478_v35 = vor.u32 %v477_v26, %v474_v22  ;;  %v491_v37 = vshll.u32 %v4844_v11, 16  ;;  %v496_v40 = vshrl.u32 %v4848_v15, 16  ;;  %v499_v49 = vshll.u32 %v4848_v15, 16 }
  0x36   : > { %5720 = vst [vmem:[#allocation7_spill] sm:$0xff] %v4855_v7  ;;  %4087 = vmatprep.mubr.msk.bf16.mxu0 %vm737_vm3, %v4855_v7  ;;  %3952 = vmatmul.mubr.msk.bf16.gmra.mrb[8].mxu1 %vm737_vm3, %v4855_v7  ;;  %v460_v41 = vsel %vm4703_vm4, %v455_v29, %v459_v54  ;;  %v465_v44 = vrot.slane %v464_v30, 4  ;;  %v505_v50 = vshll.u32 %v4853_v27, 16  ;;  %v487_v55 = vrot.slane %v485_v36, 4  ;;  %v4875_v54 = vld [vmem:[%s4656_s30 + $0x6c] sm:$0xf] }
  0x37   : > { %v479_v51 = vrot.slane %v478_v35, 4  ;;  %v493_v56 = vrot.slane %v491_v37, 5  ;;  %v498_v58 = vrot.slane %v496_v40, 4  ;;  %v501_v60 = vrot.slane %v499_v49, 5  ;;  %v4891_v36 = vld [vmem:[%s4656_s30 + $0x70] sm:$0xf] }
  0x38   : > { %v470_v59 = vsel %vm4703_vm4, %v465_v44, %v469_v21  ;;  %v507_v61 = vrot.slane %v505_v50, 5  ;;  %v509_v63 = vshrl.u32 %v4853_v27, 16  ;;  %v488_v17 = vor.u32 %v487_v55, %v483_v31  ;;  %v5042_v7 = vld [vmem:[%s4656_s30 + $0xa0] sm:$0xf] }
  0x39   : > { %v4877_v0 = vcombine.low %v460_v41, %v470_v59  ;;  %v484_v12 = vsel %vm4703_vm4, %v479_v51, %v483_v31  ;;  %v515_v22 = vshll.u32 %v4867_v47, 16  ;;  %v502_v21 = vor.u32 %v501_v60, %v498_v58  ;;  %v4904_v51 = vld [vmem:[%s4656_s30 + $0x74] sm:$0x1] }
  0x3a   : > { %v511_v29 = vrot.slane %v509_v63, 4  ;;  %v3467_v30 = vrot.slane %v4681_v16, 9  ;;  %v1271_v35 = vrot.slane %v4684_v18, 5  ;;  %v489_v31 = vrot.slane %v488_v17, 4 }
  0x3b   : > { %5721 = vst [vmem:[#allocation8_spill] sm:$0xff] %v4877_v0  ;;  %4088 = vmatmul.mubr.msk.bf16.gmra.mrb[8].mxu0 %vm737_vm3, %v4877_v0  ;;  %3955 = vmatprep.mubr.msk.bf16.mxu1 %vm737_vm3, %v4877_v0  ;;  %v517_v37 = vrot.slane %v515_v22, 5  ;;  %v520_v40 = vshrl.u32 %v4875_v54, 16  ;;  %v523_v41 = vshll.u32 %v4875_v54, 16  ;;  %v503_v44 = vrot.slane %v502_v21, 4 }
  0x3c   : > { %v512_v49 = vor.u32 %v511_v29, %v507_v61  ;;  %v1272_v16 = vsel %vm4884_vm7, %v3467_v30, %v1271_v35  ;;  %v1273_v18 = vrot.slane %v1271_v35, 4  ;;  %v494_v50 = vsel %vm4703_vm4, %v489_v31, %v493_v56  ;;  %v4916_v56 = vld [vmem:[%s4656_s30 + $0x78] sm:$0xf]  ;;  %v4932_v31 = vld [vmem:[%s4656_s30 + $0x7c] sm:$0xf] }
  0x3d   : > { %v522_v55 = vrot.slane %v520_v40, 4  ;;  %v525_v58 = vrot.slane %v523_v41, 5  ;;  %v529_v59 = vshll.u32 %v4891_v36, 16  ;;  %v4907_v60 = vcombine.low %v484_v12, %v494_v50 }
  0x3e   : > { %v508_v63 = vsel %vm4703_vm4, %v503_v44, %v507_v61  ;;  %v513_v17 = vrot.slane %v512_v49, 4  ;;  %v1275_v22 = vsel %vm4884_vm7, %v1273_v18, %v1274_v45  ;;  %v533_v35 = vshrl.u32 %v4891_v36, 16  ;;  %v4937_v49 = vld [vmem:[%s4656_s30 + $0x80] sm:$0x1] }
  0x3f   : > { %5724 = vst [vmem:[#allocation9_spill] sm:$0xff] %v4907_v60  ;;  %v4918_v21 = vcombine.low %v1272_v16, %v1275_v22  ;;  %v526_v29 = vor.u32 %v525_v58, %v522_v55  ;;  %v531_v30 = vrot.slane %v529_v59, 5  ;;  %4091 = vmatprep.mubr.msk.bf16.mxu0 %vm737_vm3, %v4907_v60  ;;  %3956 = vmatmul.mubr.msk.bf16.gmra.mrb[12].mxu1 %vm737_vm3, %v4907_v60  ;;  %v539_v45 = vshll.u32 %v4904_v51, 16  ;;  %v5035_v60 = vld [vmem:[%s4656_s30 + $0x9c] sm:$0xf] }
  0x40   : > { %v518_v19 = vsel %vm4703_vm4, %v513_v17, %v517_v37  ;;  %v3468_v61 = vrot.slane %v4699_v33, 9  ;;  %v1280_v12 = vrot.slane %v1278_v1, 4  ;;  %v535_v44 = vrot.slane %v533_v35, 4 }
  0x41   : > { %5725 = vst [vmem:[#allocation10_spill] sm:$0xff] %v4918_v21  ;;  %v4934_v40 = vcombine.low %v508_v63, %v518_v19  ;;  %v527_v41 = vrot.slane %v526_v29, 4  ;;  %v544_v16 = vshrl.u32 %v4916_v56, 16  ;;  %v541_v18 = vrot.slane %v539_v45, 5  ;;  %v4963_v29 = vld [vmem:[%s4656_s30 + $0x84] sm:$0xf] }
  0x42   : > { %v1279_v37 = vsel %vm4884_vm7, %v3468_v61, %v1278_v1  ;;  %v1282_v50 = vsel %vm4884_vm7, %v1280_v12, %v1281_v2  ;;  %v547_v55 = vshll.u32 %v4916_v56, 16  ;;  %v536_v59 = vor.u32 %v535_v44, %v531_v30 }
  0x43   : > { %5726 = vst [vmem:[#allocation11_spill] sm:$0xff] %v4934_v40  ;;  %4092 = vmatmul.mubr.msk.bf16.gmra.mrb[12].mxu0 %vm737_vm3, %v4934_v40  ;;  %3959 = vmatprep.mubr.msk.bf16.mxu1 %vm737_vm3, %v4934_v40  ;;  %v532_v58 = vsel %vm4703_vm4, %v527_v41, %v531_v30  ;;  %v4955_v63 = vcombine.low %v1279_v37, %v1282_v50  ;;  %v546_v1 = vrot.slane %v544_v16, 4  ;;  %v553_v2 = vshll.u32 %v4932_v31, 16  ;;  %v4969_v16 = vld [vmem:[%s4656_s30 + $0x88] sm:$0xf] }
  0x44   : > { %4113 = vmatprep.mubr.msk.bf16.mxu0 %vm737_vm3, %v4918_v21  ;;  %v549_v46 = vrot.slane %v547_v55, 5  ;;  %v557_v17 = vshrl.u32 %v4932_v31, 16  ;;  %v563_v22 = vshll.u32 %v4937_v49, 16  ;;  %v537_v35 = vrot.slane %v536_v59, 4 }
  0x45   : > { %5727 = vst [vmem:[#allocation12_spill] sm:$0xff] %v4955_v63  ;;  %v3469_v30 = vrot.slane %v4726_v57, 9  ;;  %v1285_v19 = vrot.slane %v4731_v62, 5  ;;  %v1288_v45 = vrot.slane %v4739_v4, 5  ;;  %v555_v12 = vrot.slane %v553_v2, 5 }
  0x46   : > { %v550_v61 = vor.u32 %v549_v46, %v546_v1  ;;  %v559_v41 = vrot.slane %v557_v17, 4  ;;  %v565_v44 = vrot.slane %v563_v22, 5  ;;  %v542_v37 = vsel %vm4703_vm4, %v537_v35, %v541_v18  ;;  %v4979_v1 = vld [vmem:[%s4656_s30 + $0x8c] sm:$0x1] }
  0x47   : > { %v1286_v50 = vsel %vm4884_vm7, %v3469_v30, %v1285_v19  ;;  %v1287_v55 = vrot.slane %v1285_v19, 4  ;;  %v568_v59 = vshrl.u32 %v4963_v29, 16  ;;  %v4976_v3 = vcombine.low %v532_v58, %v542_v37 }
  0x48   : > { %v551_v40 = vrot.slane %v550_v61, 4  ;;  %v560_v4 = vor.u32 %v559_v41, %v555_v12  ;;  %v571_v46 = vshll.u32 %v4963_v29, 16  ;;  %v577_v18 = vshll.u32 %v4969_v16, 16  ;;  %v4993_v61 = vld [vmem:[%s4656_s30 + $0x90] sm:$0xf] }
  0x49   : > { %5728 = vst [vmem:[#allocation13_spill] sm:$0xff] %v4976_v3  ;;  %v1289_v2 = vsel %vm4884_vm7, %v1287_v55, %v1288_v45  ;;  %v570_v17 = vrot.slane %v568_v59, 4  ;;  %v581_v22 = vshrl.u32 %v4969_v16, 16  ;;  %3960 = vmatmul.mubr.msk.bf16.gmra.mrb[16].mxu1 %vm737_vm3, %v4976_v3  ;;  %v4998_v45 = vld [vmem:[%s5678_s1 + $0xe] sm:$0x3]  ;;  %v1292_v59 = vrot.slane %v4757_v28, 5 }
  0x4a   : > { %v556_v58 = vsel %vm4703_vm4, %v551_v40, %v555_v12  ;;  %v561_v35 = vrot.slane %v560_v4, 4  ;;  %v4990_v30 = vcombine.low %v1286_v50, %v1289_v2  ;;  %v573_v19 = vrot.slane %v571_v46, 5  ;;  %5730 = vst [vmem:[#allocation15_spill] sm:$0xff] %v4998_v45  ;;  %v5012_v46 = vld [vmem:[%s4656_s30 + $0x94] sm:$0xf] }
  0x4b   : > { %4114 = vmatmul.mubr.msk.bf16.vlgmr.msra.gmra.mrb[0].mxu0 %vm737_vm3, %v4955_v63  ;;  %v579_v41 = vrot.slane %v577_v18, 5  ;;  %v583_v37 = vrot.slane %v581_v22, 4  ;;  %v587_v40 = vshll.u32 %v4979_v1, 16  ;;  %v3470_v12 = vrot.slane %v4745_v14, 9  ;;  %v5017_v3 = vld [vmem:[%s4656_s30 + $0x98] sm:$0x1] }
  0x4c   : > { %5729 = vst [vmem:[#allocation14_spill] sm:$0xff] %v4990_v30  ;;  %4146 = vmatpush3.bf16.msra.mxu0 %v4691_v20  ;;  %v566_v50 = vsel %vm4703_vm4, %v561_v35, %v565_v44  ;;  %4117 = vmatprep.mubr.msk.bf16.mxu0 %vm737_vm3, %v4990_v30  ;;  %v574_v55 = vor.u32 %v573_v19, %v570_v17  ;;  %v1295_v4 = vrot.slane %v4764_v32, 5  ;;  %v592_v20 = vshrl.u32 %v4993_v61, 16 }
  0x4d   : > { %v5014_v2 = vcombine.low %v556_v58, %v566_v50  ;;  %v584_v18 = vor.u32 %v583_v37, %v579_v41  ;;  %v589_v22 = vrot.slane %v587_v40, 5  ;;  %4513 = vmatprep.subr.msk.bf16.mxu0 %vm786_vm0, %v4998_v45  ;;  %v1293_v17 = vsel %vm4884_vm7, %v3470_v12, %v1292_v59 }
  0x4e   : > { %v575_v44 = vrot.slane %v574_v55, 4  ;;  %v1294_v35 = vrot.slane %v1292_v59, 4  ;;  %v595_v32 = vshll.u32 %v4993_v61, 16  ;;  %v594_v19 = vrot.slane %v592_v20, 4 }
  0x4f   : > { %5731 = vst [vmem:[#allocation16_spill] sm:$0xff] %v5014_v2  ;;  %3963 = vmatprep.mubr.msk.bf16.mxu1 %vm737_vm3, %v5014_v2  ;;  %v585_v58 = vrot.slane %v584_v18, 4  ;;  %v601_v37 = vshll.u32 %v5012_v46, 16  ;;  %v605_v40 = vshrl.u32 %v5012_v46, 16  ;;  %v611_v59 = vshll.u32 %v5017_v3, 16 }
  0x50   : > { %v580_v50 = vsel %vm4703_vm4, %v575_v44, %v579_v41  ;;  %v1296_v55 = vsel %vm4884_vm7, %v1294_v35, %v1295_v4  ;;  %v597_v12 = vrot.slane %v595_v32, 5  ;;  %v3471_v4 = vrot.slane %v4772_v48, 9 }
  0x51   : > { %v590_v2 = vsel %vm4703_vm4, %v585_v58, %v589_v22  ;;  %v5039_v18 = vcombine.low %v1293_v17, %v1296_v55  ;;  %v603_v20 = vrot.slane %v601_v37, 5  ;;  %v607_v0 = vrot.slane %v605_v40, 4  ;;  %v5055_v58 = vld [vmem:[%s4656_s30 + $0xa4] sm:$0x1] }
  0x52   : > { %v5044_v43 = vcombine.low %v580_v50, %v590_v2  ;;  %v598_v41 = vor.u32 %v597_v12, %v594_v19  ;;  %v613_v44 = vrot.slane %v611_v59, 5  ;;  %v1299_v32 = vrot.slane %v4780_v52, 5 }
  0x53   : > { %5732 = vst [vmem:[#allocation17_spill] sm:$0xff] %v5039_v18  ;;  %4118 = vmatmul.mubr.msk.bf16.gmra.mrb[4].mxu0 %vm737_vm3, %v5039_v18  ;;  %v608_v35 = vor.u32 %v607_v0, %v603_v20  ;;  %v1302_v22 = vrot.slane %v4792_v5, 5  ;;  %v616_v17 = vshrl.u32 %v5035_v60, 16  ;;  %v619_v19 = vshll.u32 %v5035_v60, 16 }
  0x54   : > { %5733 = vst [vmem:[#allocation18_spill] sm:$0xff] %v5044_v43  ;;  %3964 = vmatmul.mubr.msk.bf16.gmra.mrb[20].mxu1 %vm737_vm3, %v5044_v43  ;;  %v599_v2 = vrot.slane %v598_v41, 4  ;;  %v625_v37 = vshll.u32 %v5042_v7, 16  ;;  %v629_v0 = vshrl.u32 %v5042_v7, 16  ;;  %v1300_v5 = vsel %vm4884_vm7, %v3471_v4, %v1299_v32 }
  0x55   : > { %v609_v40 = vrot.slane %v608_v35, 4  ;;  %v1301_v50 = vrot.slane %v1299_v32, 4  ;;  %v618_v55 = vrot.slane %v616_v17, 4  ;;  %v621_v59 = vrot.slane %v619_v19, 5  ;;  %v5074_v32 = vld [vmem:[%s4656_s30 + $0xac] sm:$0xf] }
  0x56   : > { %v604_v12 = vsel %vm4703_vm4, %v599_v2, %v603_v20  ;;  %v627_v41 = vrot.slane %v625_v37, 5  ;;  %v631_v43 = vrot.slane %v629_v0, 4  ;;  %v635_v35 = vshll.u32 %v5055_v58, 16 }
  0x57   : > { %v614_v53 = vsel %vm4703_vm4, %v609_v40, %v613_v44  ;;  %v1303_v18 = vsel %vm4884_vm7, %v1301_v50, %v1302_v22  ;;  %v3472_v4 = vrot.slane %v4797_v13, 9  ;;  %v622_v2 = vor.u32 %v621_v59, %v618_v55 }
  0x58   : > { %v5076_v17 = vcombine.low %v604_v12, %v614_v53  ;;  %v5078_v20 = vcombine.low %v1300_v5, %v1303_v18  ;;  %v632_v19 = vor.u32 %v631_v43, %v627_v41  ;;  %v637_v37 = vrot.slane %v635_v35, 5  ;;  %v5088_v18 = vld [vmem:[%s4656_s30 + $0xb0] sm:$0x1] }
  0x59   : > { %v1306_v0 = vrot.slane %v4804_v24, 5  ;;  %v1309_v44 = vrot.slane %v4821_v8, 5  ;;  %v640_v22 = vshrl.u32 %v5065_v25, 16  ;;  %v623_v53 = vrot.slane %v622_v2, 4 }
  0x5a   : > { %5734 = vst [vmem:[#allocation19_spill] sm:$0xff] %v5076_v17  ;;  %5735 = vst [vmem:[#allocation20_spill] sm:$0xff] %v5078_v20  ;;  %3967 = vmatprep.mubr.msk.bf16.mxu1 %vm737_vm3, %v5076_v17  ;;  %4121 = vmatprep.mubr.msk.bf16.mxu0 %vm737_vm3, %v5078_v20  ;;  %v633_v40 = vrot.slane %v632_v19, 4  ;;  %v643_v43 = vshll.u32 %v5065_v25, 16  ;;  %v649_v5 = vshll.u32 %v5074_v32, 16  ;;  %v653_v12 = vshrl.u32 %v5074_v32, 16 }
  0x5b   : > { %v1307_v8 = vsel %vm4884_vm7, %v3472_v4, %v1306_v0  ;;  %v1308_v50 = vrot.slane %v1306_v0, 4  ;;  %v642_v55 = vrot.slane %v640_v22, 4  ;;  %v628_v59 = vsel %vm4703_vm4, %v623_v53, %v627_v41  ;;  %v5100_v17 = vld [vmem:[%s4656_s30 + $0xb4] sm:$0xf]  ;;  %v5112_v53 = vld [vmem:[%s4656_s30 + $0xb8] sm:$0xf] }
  0x5c   : > { %v638_v35 = vsel %vm4703_vm4, %v633_v40, %v637_v37  ;;  %v645_v2 = vrot.slane %v643_v43, 5  ;;  %v651_v19 = vrot.slane %v649_v5, 5  ;;  %v655_v0 = vrot.slane %v653_v12, 4 }
  0x5d   : > { %v5102_v20 = vcombine.low %v628_v59, %v638_v35  ;;  %v1310_v4 = vsel %vm4884_vm7, %v1308_v50, %v1309_v44  ;;  %v659_v22 = vshll.u32 %v5088_v18, 16  ;;  %v3473_v41 = vrot.slane %v4826_v42, 9  ;;  %v5118_v44 = vld [vmem:[%s4656_s30 + $0xbc] sm:$0x1] }
  0x5e   : > { %v5107_v30 = vcombine.low %v1307_v8, %v1310_v4  ;;  %v646_v63 = vor.u32 %v645_v2, %v642_v55  ;;  %v1313_v37 = vrot.slane %v4831_v6, 5  ;;  %v656_v40 = vor.u32 %v655_v0, %v651_v19 }
  0x5f   : > { %5736 = vst [vmem:[#allocation21_spill] sm:$0xff] %v5102_v20  ;;  %3968 = vmatmul.mubr.msk.bf16.gmra.mrb[24].mxu1 %vm737_vm3, %v5102_v20  ;;  %v661_v43 = vrot.slane %v659_v22, 5  ;;  %v1316_v5 = vrot.slane %v4844_v11, 5  ;;  %v664_v50 = vshrl.u32 %v5100_v17, 16  ;;  %v667_v59 = vshll.u32 %v5100_v17, 16 }
  0x60   : > { %5737 = vst [vmem:[#allocation22_spill] sm:$0xff] %v5107_v30  ;;  %4122 = vmatmul.mubr.msk.bf16.gmra.mrb[8].mxu0 %vm737_vm3, %v5107_v30  ;;  %v647_v8 = vrot.slane %v646_v63, 4  ;;  %v1314_v55 = vsel %vm4884_vm7, %v3473_v41, %v1313_v37  ;;  %v1315_v12 = vrot.slane %v1313_v37, 4  ;;  %v657_v35 = vrot.slane %v656_v40, 4 }
  0x61   : > { %v666_v2 = vrot.slane %v664_v50, 4  ;;  %v673_v4 = vshll.u32 %v5112_v53, 16  ;;  %v677_v11 = vshrl.u32 %v5112_v53, 16  ;;  %v669_v20 = vrot.slane %v667_v59, 5 }
  0x62   : > { %v652_v0 = vsel %vm4703_vm4, %v647_v8, %v651_v19  ;;  %v1317_v22 = vsel %vm4884_vm7, %v1315_v12, %v1316_v5  ;;  %v683_v63 = vshll.u32 %v5118_v44, 16  ;;  %v662_v41 = vsel %vm4703_vm4, %v657_v35, %v661_v43 }
  0x63   : > { %v5135_v37 = vcombine.low %v1314_v55, %v1317_v22  ;;  %v675_v40 = vrot.slane %v673_v4, 5  ;;  %v679_v50 = vrot.slane %v677_v11, 4  ;;  %v5137_v30 = vcombine.low %v652_v0, %v662_v41 }
  0x64   : > { %v670_v21 = vor.u32 %v669_v20, %v666_v2  ;;  %v685_v45 = vrot.slane %v683_v63, 5  ;;  %v3474_v42 = vrot.slane %v4848_v15, 9  ;;  %v1320_v5 = vrot.slane %v4853_v27, 5 }
  0x65   : > { %4125 = vmatprep.mubr.msk.bf16.mxu0 %vm737_vm3, %v5135_v37  ;;  %v680_v19 = vor.u32 %v679_v50, %v675_v40  ;;  %v1323_v8 = vrot.slane %v4867_v47, 5  ;;  %v3475_v43 = vrot.slane %v4875_v54, 9  ;;  %3971 = vmatprep.mubr.msk.bf16.mxu1 %vm737_vm3, %v5137_v30  ;;  %v3434_v20 = vcombine.low %v4670_v9, %v4673_v10 }
  0x66   : > { %v671_v55 = vrot.slane %v670_v21, 4  ;;  %v1327_v12 = vrot.slane %v4891_v36, 5  ;;  %v1330_v59 = vrot.slane %v4904_v51, 5  ;;  %v1321_v2 = vsel %vm4884_vm7, %v3474_v42, %v1320_v5 }
  0x67   : > { %v681_v35 = vrot.slane %v680_v19, 4  ;;  %v1322_v4 = vrot.slane %v1320_v5, 4  ;;  %v1334_v47 = vrot.slane %v4932_v31, 5  ;;  %v3476_v9 = vrot.slane %v4916_v56, 9 }
  0x68   : > { %v676_v11 = vsel %vm4703_vm4, %v671_v55, %v675_v40  ;;  %v1328_v21 = vsel %vm4884_vm7, %v3475_v43, %v1327_v12  ;;  %v1329_v0 = vrot.slane %v1327_v12, 4  ;;  %v1337_v42 = vrot.slane %v4937_v49, 5 }
  0x69   : > { %v686_v10 = vsel %vm4703_vm4, %v681_v35, %v685_v45  ;;  %v1324_v51 = vsel %vm4884_vm7, %v1322_v4, %v1323_v8  ;;  %v1336_v22 = vrot.slane %v1334_v47, 4  ;;  %v3477_v19 = vrot.slane %v4963_v29, 9 }
  0x6a   : > { %v5164_v63 = vcombine.low %v676_v11, %v686_v10  ;;  %v5166_v41 = vcombine.low %v1321_v2, %v1324_v51  ;;  %v1331_v40 = vsel %vm4884_vm7, %v1329_v0, %v1330_v59  ;;  %v1341_v5 = vrot.slane %v4969_v16, 5 }
  0x6b   : > { %v5170_v50 = vcombine.low %v1328_v21, %v1331_v40  ;;  %v1344_v49 = vrot.slane %v4979_v1, 5  ;;  %v1335_v45 = vsel %vm4884_vm7, %v3476_v9, %v1334_v47  ;;  %v1338_v8 = vsel %vm4884_vm7, %v1336_v22, %v1337_v42 }
  0x6c   : > { %3972 = vmatmul.mubr.msk.bf16.gmra.mrb[28].mxu1 %vm737_vm3, %v5164_v63  ;;  %4126 = vmatmul.mubr.msk.bf16.gmra.mrb[12].mxu0 %vm737_vm3, %v5166_v41  ;;  %v1343_v43 = vrot.slane %v1341_v5, 4  ;;  %v1348_v55 = vrot.slane %v5012_v46, 5  ;;  %v1355_v12 = vrot.slane %v5042_v7, 5  ;;  %v1342_v59 = vsel %vm4884_vm7, %v3477_v19, %v1341_v5 }
  0x6d   : > { %3977 = vmatprep.mubr.msk.bf16.mxu1 %vm737_vm3, %v3434_v20  ;;  %4129 = vmatprep.mubr.msk.bf16.mxu0 %vm737_vm3, %v5170_v50  ;;  %v5192_v20 = vcombine.low %v1335_v45, %v1338_v8  ;;  %v3478_v35 = vrot.slane %v4993_v61, 9  ;;  %v1351_v4 = vrot.slane %v5017_v3, 5  ;;  %v5198_v47 = vcombine.low %v4699_v33, %v4712_v39  ;;  %v5210_v3 = vld [vmem:[%s5678_s1 + $0x6] sm:$0x3] }
  0x6e   : > { %v1345_v1 = vsel %vm4884_vm7, %v1343_v43, %v1344_v49  ;;  %v1350_v2 = vrot.slane %v1348_v55, 4  ;;  %v3479_v11 = vrot.slane %v5035_v60, 9  ;;  %v1473_v21 = vsel %vm786_vm0, %v4752_v23, 0 }
  0x6f   : > { %v5203_v0 = vcombine.low %v1342_v59, %v1345_v1  ;;  %v1357_v9 = vrot.slane %v1355_v12, 4  ;;  %v1358_v10 = vrot.slane %v5055_v58, 5  ;;  %v1362_v51 = vrot.slane %v5074_v32, 5 }
  0x70   : > { %v1349_v33 = vsel %vm4884_vm7, %v3478_v35, %v1348_v55  ;;  %v1352_v39 = vsel %vm4884_vm7, %v1350_v2, %v1351_v4  ;;  %v5224_v23 = vcombine.low %v4726_v57, %v4731_v62  ;;  %v1356_v58 = vsel %vm4884_vm7, %v3479_v11, %v1355_v12 }
  0x71   : > { %v5230_v22 = vcombine.low %v4848_v15, %v4853_v27  ;;  %v1359_v42 = vsel %vm4884_vm7, %v1357_v9, %v1358_v10  ;;  %v3480_v40 = vrot.slane %v5065_v25, 9  ;;  %v1369_v19 = vrot.slane %v5112_v53, 5 }
  0x72   : > { %v5240_v57 = vcombine.low %v4875_v54, %v4891_v36  ;;  %v5244_v62 = vcombine.low %v1349_v33, %v1352_v39  ;;  %v1364_v15 = vrot.slane %v1362_v51, 4  ;;  %v1365_v27 = vrot.slane %v5088_v18, 5  ;;  %v295_v18 = vld [vmem:[%s4656_s30 + $0xc8] sm:$0x1] }
  0x73   : > { %v5249_v5 = vcombine.low %v4916_v56, %v4932_v31  ;;  %v5253_v49 = vcombine.low %v4963_v29, %v4969_v16  ;;  %v5257_v54 = vcombine.low %v4993_v61, %v5012_v46  ;;  %v5261_v36 = vcombine.low %v5035_v60, %v5042_v7  ;;  %v5280_v61 = vld [vmem:[%s4656_s30 + $0xc4] sm:$0xf] }
  0x74   : > { %3978 = vmatmul.mubr.msk.bf16.vlgmr.msra.gmra.mrb[0].mxu1 %vm737_vm3, %v4709_v38  ;;  %4130 = vmatmul.mubr.msk.bf16.gmra.mrb[16].mxu0 %vm737_vm3, %v5192_v20  ;;  %v5265_v45 = vcombine.low %v5065_v25, %v5074_v32  ;;  %v5269_v56 = vcombine.low %v4745_v14, %v4757_v28  ;;  %v5271_v31 = vcombine.low %v1356_v58, %v1359_v42  ;;  %v3481_v16 = vrot.slane %v5100_v17, 9  ;;  %v5738_v42 = vld [vmem:[#allocation5_spill] sm:$0xff] }
  0x75   : > { %4010 = vmatpush3.bf16.msra.mxu1 %v1473_v21  ;;  %3981 = vmatprep.mubr.msk.bf16.mxu1 %vm737_vm3, %v5198_v47  ;;  %v5275_v29 = vcombine.low %v5100_v17, %v5112_v53  ;;  %v1371_v7 = vrot.slane %v1369_v19, 4  ;;  %v1372_v60 = vrot.slane %v5118_v44, 5  ;;  %v1363_v14 = vsel %vm4884_vm7, %v3480_v40, %v1362_v51  ;;  %v5300_v17 = vld [vmem:[%s4656_s30 + $0xc0] sm:$0xf] }
  0x76   : > { %4133 = vmatprep.mubr.msk.bf16.mxu0 %vm737_vm3, %v5203_v0  ;;  %4508 = vmatprep.subr.msk.bf16.mxu1 %vm786_vm0, %v5210_v3  ;;  %v1366_v28 = vsel %vm4884_vm7, %v1364_v15, %v1365_v27  ;;  %v2105_v25 = vrot.slane %v5280_v61, 5  ;;  %v1370_v46 = vsel %vm4884_vm7, %v3481_v16, %v1369_v19  ;;  %v5305_v53 = vcombine.low %v4772_v48, %v4780_v52 }
  0x77   : > { %v1373_v32 = vsel %vm4884_vm7, %v1371_v7, %v1372_v60  ;;  %v5307_v44 = vcombine.low %v1363_v14, %v1366_v28  ;;  %v5311_v8 = vcombine.low %v4797_v13, %v4804_v24  ;;  %v1875_v43 = vshrl.u32 %v5300_v17, 16  ;;  %v3607_v60 = vld [vmem:[%s5678_s1 + $0x10] sm:$0x3]  ;;  %v4558_v14 = vld [vmem:[%s4656_s30 + $0x4] sm:$0xf] }
  0x78   : > { %v1878_v55 = vshll.u32 %v5300_v17, 16  ;;  %v1884_v12 = vshll.u32 %v5280_v61, 16  ;;  %v1888_v59 = vshrl.u32 %v5280_v61, 16  ;;  %v5317_v1 = vcombine.low %v1370_v46, %v1373_v32  ;;  %v4560_v32 = vld [vmem:[%s4656_s30] sm:$0xf] }
  0x79   : > { %v3551_v35 = vrot.slane %v5300_v17, 9  ;;  %v2107_v48 = vrot.slane %v2105_v25, 4  ;;  %v2108_v52 = vrot.slane %v295_v18, 5  ;;  %v1877_v2 = vrot.slane %v1875_v43, 4 }
  0x7a   : > { %v1880_v4 = vrot.slane %v1878_v55, 5  ;;  %v1886_v11 = vrot.slane %v1884_v12, 5  ;;  %v1890_v21 = vrot.slane %v1888_v59, 4  ;;  %v1894_v9 = vshll.u32 %v295_v18, 16 }
  0x7b   : > { %v2106_v10 = vsel %vm4884_vm7, %v3551_v35, %v2105_v25  ;;  %v2109_v51 = vsel %vm4884_vm7, %v2107_v48, %v2108_v52  ;;  %v5334_v40 = vcombine.low %v5738_v42, %v4831_v6  ;;  %v5739_v6 = vld [vmem:[#allocation15_spill] sm:$0xff]  ;;  %v1264_v28 = vrot.slane %v4558_v14, 5  ;;  %v5740_v48 = vld [vmem:[#allocation10_spill] sm:$0xff]  ;;  %v5741_v52 = vld [vmem:[#allocation12_spill] sm:$0xff] }
  0x7c   : > { %3982 = vmatmul.mubr.msk.bf16.gmra.mrb[4].mxu1 %vm737_vm3, %v5224_v23  ;;  %4134 = vmatmul.mubr.msk.bf16.gmra.mrb[20].mxu0 %vm737_vm3, %v5244_v62  ;;  %v1881_v13 = vor.u32 %v1880_v4, %v1877_v2  ;;  %v1891_v24 = vor.u32 %v1890_v21, %v1886_v11  ;;  %v1896_v58 = vrot.slane %v1894_v9, 5  ;;  %v5336_v19 = vcombine.low %v2106_v10, %v2109_v51  ;;  %v4559_v25 = vld [vmem:[%s4656_s30 + $0x8] sm:$0x1]  ;;  %v5743_v4 = vld [vmem:[#allocation17_spill] sm:$0xff]  ;;  %v5744_v21 = vld [vmem:[#allocation20_spill] sm:$0xff] }
  0x7d   : > { %3985 = vmatprep.mubr.msk.bf16.mxu1 %vm737_vm3, %v5269_v56  ;;  %4137 = vmatprep.mubr.msk.bf16.mxu0 %vm737_vm3, %v5271_v31  ;;  %v2553_v7 = vsel %vm786_vm0, %v5739_v6, 0  ;;  %v1267_v46 = vrot.slane %v4559_v25, 5  ;;  %v3466_v18 = vrot.slane %v4560_v32, 9  ;;  %v1266_v43 = vrot.slane %v1264_v28, 4  ;;  %v4561_v2 = vld [vmem:[%s5678_s1 + $0x8] sm:$0x3] }
  0x7e   : > { %v1882_v33 = vrot.slane %v1881_v13, 4  ;;  %v1892_v39 = vrot.slane %v1891_v24, 4  ;;  %v1679_v35 = vsel %vm786_vm0, %v5210_v3, 0  ;;  %v5742_v3 = vld [vmem:[#allocation14_spill] sm:$0xff]  ;;  %v5431_v24 = vld [vmem:[%s4656_s30 + $0xcc] sm:$0xf] }
  0x7f   : > { %v1265_v55 = vsel %vm4884_vm7, %v3466_v18, %v1264_v28  ;;  %v1268_v12 = vsel %vm4884_vm7, %v1266_v43, %v1267_v46  ;;  %v5745_v13 = vld [vmem:[#allocation22_spill] sm:$0xff]  ;;  %v5434_v9 = vld [vmem:[%s4656_s30 + $0xd0] sm:$0xf]  ;;  %v2765_v10 = vsel %vm786_vm0, %v3607_v60, 0  ;;  %v5751_v42 = vld [vmem:[#allocation9_spill] sm:$0xff]  ;;  %v2524_v14 = vshll.u32 %v5431_v24, 16 }
  0x80   : > { %v1887_v15 = vsel %vm4703_vm4, %v1882_v33, %v1886_v11  ;;  %v1897_v27 = vsel %vm4703_vm4, %v1892_v39, %v1896_v58  ;;  %v3483_v59 = vcombine.low %v1265_v55, %v1268_v12  ;;  %v5420_v11 = vcombine.low %v5300_v17, %v5280_v61  ;;  %v5746_v17 = vld [vmem:[#allocation3_spill] sm:$0xff]  ;;  %v5747_v51 = vld [vmem:[#allocation4_spill] sm:$0xff]  ;;  %v5748_v33 = vld [vmem:[#allocation6_spill] sm:$0xff] }
  0x81   : > { %v5342_v16 = vcombine.low %v1887_v15, %v1897_v27  ;;  %v3571_v61 = vcombine.low %v5431_v24, %v5434_v9  ;;  %v5749_v39 = vld [vmem:[#allocation7_spill] sm:$0xff]  ;;  %v5750_v58 = vld [vmem:[#allocation8_spill] sm:$0xff]  ;;  %v5753_v27 = vld [vmem:[#allocation13_spill] sm:$0xff]  ;;  %v2534_v28 = vshrl.u32 %v5434_v9, 16  ;;  %v2526_v32 = vrot.slane %v2524_v14, 5 }
  0x82   : > { %v5752_v15 = vld [vmem:[#allocation11_spill] sm:$0xff]  ;;  %v5754_v6 = vld [vmem:[#allocation16_spill] sm:$0xff]  ;;  %v5756_v25 = vld [vmem:[#allocation2_spill] sm:$0xff]  ;;  %v2751_v34 = vrot.slane %v5434_v9, 5 }
  0x83   : > { %v5757_v46 = vld [vmem:[#allocation19_spill] sm:$0xff]  ;;  %v2536_v43 = vrot.slane %v2534_v28, 4  ;;  %v298_v55 = vld [vmem:[%s4656_s30 + $0xd4] sm:$0x1]  ;;  %v5758_v12 = vld [vmem:[#allocation21_spill] sm:$0xff]  ;;  %s239_s30 = scalar_lea.vmem %s5681_s4, %s3400_s27 }
  0x84   : > { %3986 = vmatmul.mubr.msk.bf16.gmra.mrb[8].mxu1 %vm737_vm3, %v5305_v53  ;;  %4138 = vmatmul.mubr.msk.bf16.gmra.mrb[24].mxu0 %vm737_vm3, %v5307_v44 }
  0x85   : > { %3989 = vmatprep.mubr.msk.bf16.mxu1 %vm737_vm3, %v5311_v8  ;;  %4141 = vmatprep.mubr.msk.bf16.mxu0 %vm737_vm3, %v5317_v1 }
  0x8c   : > { %3990 = vmatmul.mubr.msk.bf16.gmra.mrb[12].mxu1 %vm737_vm3, %v5334_v40  ;;  %4142 = vmatmul.mubr.msk.bf16.gmra.mrb[28].mxu0 %vm737_vm3, %v5336_v19 }
  0x8d   : > { %3993 = vmatprep.mubr.msk.bf16.mxu1 %vm737_vm3, %v5230_v22  ;;  %4147 = vmatprep.mubr.msk.bf16.mxu0 %vm737_vm3, %v5198_v47 }
  0x94   : > { %3994 = vmatmul.mubr.msk.bf16.gmra.mrb[16].mxu1 %vm737_vm3, %v5240_v57  ;;  %4148 = vmatmul.mubr.msk.bf16.vlgmr.msra.gmra.mrb[0].mxu0 %vm737_vm3, %v5224_v23 }
  0x95   : > { %4180 = vmatpush3.bf16.msra.mxu0 %v2553_v7  ;;  %3997 = vmatprep.mubr.msk.bf16.mxu1 %vm737_vm3, %v5249_v5  ;;  %v5755_v7 = vld [vmem:[#allocation18_spill] sm:$0xff] }
  0x96   : > { %4151 = vmatprep.mubr.msk.bf16.mxu0 %vm737_vm3, %v5269_v56  ;;  %4514 = vmatprep.subr.msk.bf16.mxu0 %vm786_vm0, %v3607_v60  ;;  %v2521_v60 = vshrl.u32 %v5431_v24, 16 }
  0x9c   : > { %3998 = vmatmul.mubr.msk.bf16.gmra.mrb[20].mxu1 %vm737_vm3, %v5253_v49  ;;  %4152 = vmatmul.mubr.msk.bf16.gmra.mrb[4].mxu0 %vm737_vm3, %v5305_v53 }
  0x9d   : > { %4001 = vmatprep.mubr.msk.bf16.mxu1 %vm737_vm3, %v5257_v54  ;;  %4155 = vmatprep.mubr.msk.bf16.mxu0 %vm737_vm3, %v5311_v8 }
  0xa4   : > { %4002 = vmatmul.mubr.msk.bf16.gmra.mrb[24].mxu1 %vm737_vm3, %v5261_v36  ;;  %4156 = vmatmul.mubr.msk.bf16.gmra.mrb[8].mxu0 %vm737_vm3, %v5334_v40 }
  0xa5   : > { %4005 = vmatprep.mubr.msk.bf16.mxu1 %vm737_vm3, %v5265_v45  ;;  %4159 = vmatprep.mubr.msk.bf16.mxu0 %vm737_vm3, %v5230_v22 }
  0xac   : > { %4006 = vmatmul.mubr.msk.bf16.gmra.mrb[28].mxu1 %vm737_vm3, %v5275_v29  ;;  %4160 = vmatmul.mubr.msk.bf16.gmra.mrb[12].mxu0 %vm737_vm3, %v5240_v57 }
  0xad   : > { %4011 = vmatprep.mubr.msk.bf16.mxu1 %vm737_vm3, %v3483_v59  ;;  %4163 = vmatprep.mubr.msk.bf16.mxu0 %vm737_vm3, %v5249_v5 }
  0xb4   : > { %4012 = vmatmul.mubr.msk.bf16.vlgmr.msra.gmra.mrb[0].mxu1 %vm737_vm3, %v5740_v48  ;;  %4164 = vmatmul.mubr.msk.bf16.gmra.mrb[16].mxu0 %vm737_vm3, %v5253_v49 }
  0xb5   : > { %4044 = vmatpush3.bf16.msra.mxu1 %v1679_v35  ;;  %4015 = vmatprep.mubr.msk.bf16.mxu1 %vm737_vm3, %v5741_v52  ;;  %v2540_v35 = vshll.u32 %v298_v55, 16 }
  0xb6   : > { %4167 = vmatprep.mubr.msk.bf16.mxu0 %vm737_vm3, %v5257_v54  ;;  %4510 = vmatprep.subr.msk.bf16.mxu1 %vm786_vm0, %v4561_v2 }
  0xbc   : > { %4016 = vmatmul.mubr.msk.bf16.gmra.mrb[4].mxu1 %vm737_vm3, %v5742_v3  ;;  %4168 = vmatmul.mubr.msk.bf16.gmra.mrb[20].mxu0 %vm737_vm3, %v5261_v36 }
  0xbd   : > { %4019 = vmatprep.mubr.msk.bf16.mxu1 %vm737_vm3, %v5743_v4  ;;  %4171 = vmatprep.mubr.msk.bf16.mxu0 %vm737_vm3, %v5265_v45 }
  0xc4   : > { %4020 = vmatmul.mubr.msk.bf16.gmra.mrb[8].mxu1 %vm737_vm3, %v5744_v21  ;;  %4172 = vmatmul.mubr.msk.bf16.gmra.mrb[24].mxu0 %vm737_vm3, %v5275_v29 }
  0xc5   : > { %4023 = vmatprep.mubr.msk.bf16.mxu1 %vm737_vm3, %v5745_v13  ;;  %4175 = vmatprep.mubr.msk.bf16.mxu0 %vm737_vm3, %v5420_v11 }
  0xcc   : > { %4024 = vmatmul.mubr.msk.bf16.gmra.mrb[12].mxu1 %vm737_vm3, %v5135_v37  ;;  %4176 = vmatmul.mubr.msk.bf16.gmra.mrb[28].mxu0 %vm737_vm3, %v3571_v61  ;;  %v2542_v61 = vrot.slane %v2540_v35, 5 }
  0xcd   : > { %4027 = vmatprep.mubr.msk.bf16.mxu1 %vm737_vm3, %v5166_v41  ;;  %4181 = vmatprep.mubr.msk.bf16.mxu0 %vm737_vm3, %v5746_v17 }
  0xd4   : > { %4028 = vmatmul.mubr.msk.bf16.gmra.mrb[16].mxu1 %vm737_vm3, %v5170_v50  ;;  %4182 = vmatmul.mubr.msk.bf16.vlgmr.msra.gmra.mrb[0].mxu0 %vm737_vm3, %v5747_v51 }
  0xd5   : > { %4214 = vmatpush3.bf16.msra.mxu0 %v2765_v10  ;;  %4031 = vmatprep.mubr.msk.bf16.mxu1 %vm737_vm3, %v5192_v20 }
  0xd6   : > { %4185 = vmatprep.mubr.msk.bf16.mxu0 %vm737_vm3, %v5748_v33 }
  0xdc   : > { %4032 = vmatmul.mubr.msk.bf16.gmra.mrb[20].mxu1 %vm737_vm3, %v5203_v0  ;;  %4186 = vmatmul.mubr.msk.bf16.gmra.mrb[4].mxu0 %vm737_vm3, %v5749_v39 }
  0xdd   : > { %4035 = vmatprep.mubr.msk.bf16.mxu1 %vm737_vm3, %v5244_v62  ;;  %4189 = vmatprep.mubr.msk.bf16.mxu0 %vm737_vm3, %v5750_v58 }
  0xe4   : > { %4036 = vmatmul.mubr.msk.bf16.gmra.mrb[24].mxu1 %vm737_vm3, %v5271_v31  ;;  %4190 = vmatmul.mubr.msk.bf16.gmra.mrb[8].mxu0 %vm737_vm3, %v5751_v42 }
  0xe5   : > { %4039 = vmatprep.mubr.msk.bf16.mxu1 %vm737_vm3, %v5307_v44  ;;  %4193 = vmatprep.mubr.msk.bf16.mxu0 %vm737_vm3, %v5752_v15 }
  0xec   : > { %4040 = vmatmul.mubr.msk.bf16.gmra.mrb[28].mxu1 %vm737_vm3, %v5317_v1  ;;  %4194 = vmatmul.mubr.msk.bf16.gmra.mrb[12].mxu0 %vm737_vm3, %v5753_v27 }
  0xed   : > { %4045 = vmatprep.mubr.msk.bf16.mxu1 %vm737_vm3, %v4709_v38  ;;  %4197 = vmatprep.mubr.msk.bf16.mxu0 %vm737_vm3, %v5754_v6  ;;  %v2530_v38 = vshll.u32 %v5434_v9, 16 }
  0xef   : > { %v2532_v18 = vrot.slane %v2530_v38, 5 }
  0xf1   : > { %v2537_v59 = vor.u32 %v2536_v43, %v2532_v18 }
  0xf3   : > { %v2538_v2 = vrot.slane %v2537_v59, 4 }
  0xf4   : > { %4046 = vmatmul.mubr.msk.bf16.vlgmr.msra.gmra.mrb[0].mxu1 %vm737_vm3, %v5198_v47  ;;  %4198 = vmatmul.mubr.msk.bf16.gmra.mrb[16].mxu0 %vm737_vm3, %v5755_v7  ;;  %v2523_v47 = vrot.slane %v2521_v60, 4 }
  0xf5   : > { %4248 = vmatpush3.bf16.msra.mxu1 %v5756_v25  ;;  %4049 = vmatprep.mubr.msk.bf16.mxu1 %vm737_vm3, %v5224_v23 }
  0xf6   : > { %4201 = vmatprep.mubr.msk.bf16.mxu0 %vm737_vm3, %v5757_v46  ;;  %v2527_v23 = vor.u32 %v2526_v32, %v2523_v47 }
  0xf8   : > { %v2528_v48 = vrot.slane %v2527_v23, 4 }
  0xfc   : > { %4050 = vmatmul.mubr.msk.bf16.gmra.mrb[4].mxu1 %vm737_vm3, %v5269_v56  ;;  %4202 = vmatmul.mubr.msk.bf16.gmra.mrb[20].mxu0 %vm737_vm3, %v5758_v12  ;;  %v2533_v56 = vsel %vm4703_vm4, %v2528_v48, %v2532_v18 }
  0xfd   : > { %4053 = vmatprep.mubr.msk.bf16.mxu1 %vm737_vm3, %v5305_v53  ;;  %4205 = vmatprep.mubr.msk.bf16.mxu0 %vm737_vm3, %v5137_v30  ;;  %v2543_v53 = vsel %vm4703_vm4, %v2538_v2, %v2542_v61 }
  0xfe   : > { %v3589_v17 = vcombine.low %v2533_v56, %v2543_v53 }
 0x104   : > { %4054 = vmatmul.mubr.msk.bf16.gmra.mrb[8].mxu1 %vm737_vm3, %v5311_v8  ;;  %4206 = vmatmul.mubr.msk.bf16.gmra.mrb[24].mxu0 %vm737_vm3, %v5164_v63 }
 0x105   : > { %4057 = vmatprep.mubr.msk.bf16.mxu1 %vm737_vm3, %v5334_v40  ;;  %4209 = vmatprep.mubr.msk.bf16.mxu0 %vm737_vm3, %v5342_v16 }
 0x10c   : > { %4058 = vmatmul.mubr.msk.bf16.gmra.mrb[12].mxu1 %vm737_vm3, %v5230_v22  ;;  %4210 = vmatmul.mubr.msk.bf16.gmra.mrb[28].mxu0 %vm737_vm3, %v3589_v17 }
 0x10d   : > { %4061 = vmatprep.mubr.msk.bf16.mxu1 %vm737_vm3, %v5240_v57  ;;  %4215 = vmatprep.mubr.msk.bf16.mxu0 %vm737_vm3, %v5741_v52  ;;  %v5601_v52 = vld [vmem:[%s5679_s2] ss:$0 sm:$0xff] }
 0x114   : > { %4062 = vmatmul.mubr.msk.bf16.gmra.mrb[16].mxu1 %vm737_vm3, %v5249_v5  ;;  %4216 = vmatmul.mubr.msk.bf16.vlgmr.msra.gmra.mrb[0].mxu0 %vm737_vm3, %v5742_v3 }
 0x115   : > { %4065 = vmatprep.mubr.msk.bf16.mxu1 %vm737_vm3, %v5253_v49  ;;  %4219 = vmatprep.mubr.msk.bf16.mxu0 %vm737_vm3, %v5743_v4 }
 0x11c   : > { %4066 = vmatmul.mubr.msk.bf16.gmra.mrb[20].mxu1 %vm737_vm3, %v5257_v54  ;;  %4220 = vmatmul.mubr.msk.bf16.gmra.mrb[4].mxu0 %vm737_vm3, %v5744_v21 }
 0x11d   : > { %4069 = vmatprep.mubr.msk.bf16.mxu1 %vm737_vm3, %v5261_v36  ;;  %4223 = vmatprep.mubr.msk.bf16.mxu0 %vm737_vm3, %v5745_v13 }
 0x124   : > { %4070 = vmatmul.mubr.msk.bf16.gmra.mrb[24].mxu1 %vm737_vm3, %v5265_v45  ;;  %4224 = vmatmul.mubr.msk.bf16.gmra.mrb[8].mxu0 %vm737_vm3, %v5135_v37  ;;  %v3606_v37 = vrot.slane %v5431_v24, 9 }
 0x125   : > { %4073 = vmatprep.mubr.msk.bf16.mxu1 %vm737_vm3, %v5275_v29  ;;  %4227 = vmatprep.mubr.msk.bf16.mxu0 %vm737_vm3, %v5166_v41  ;;  %v2753_v41 = vrot.slane %v2751_v34, 4 }
 0x12c   : > { %4074 = vmatmul.mubr.msk.bf16.gmra.mrb[28].mxu1 %vm737_vm3, %v5420_v11  ;;  %4228 = vmatmul.mubr.msk.bf16.gmra.mrb[12].mxu0 %vm737_vm3, %v5170_v50  ;;  %v2754_v50 = vrot.slane %v298_v55, 5 }
 0x12d   : > { %4095 = vmatprep.mubr.msk.bf16.mxu1 %vm737_vm3, %v5753_v27  ;;  %4231 = vmatprep.mubr.msk.bf16.mxu0 %vm737_vm3, %v5192_v20  ;;  %v2752_v20 = vsel %vm4884_vm7, %v3606_v37, %v2751_v34 }
 0x134   : > { %4096 = vmatmul.mubr.msk.bf16.vlgmr.msra.gmra.mrb[16].mxu1 %vm737_vm3, %v5754_v6  ;;  %4232 = vmatmul.mubr.msk.bf16.gmra.mrb[16].mxu0 %vm737_vm3, %v5203_v0  ;;  %v2755_v0 = vsel %vm4884_vm7, %v2753_v41, %v2754_v50 }
 0x135   : > { %4099 = vmatprep.mubr.msk.bf16.mxu1 %vm737_vm3, %v5755_v7  ;;  %4235 = vmatprep.mubr.msk.bf16.mxu0 %vm737_vm3, %v5244_v62  ;;  %v3608_v22 = vcombine.low %v2752_v20, %v2755_v0 }
 0x13c   : > { %4100 = vmatmul.mubr.msk.bf16.gmra.mrb[20].mxu1 %vm737_vm3, %v5757_v46  ;;  %4236 = vmatmul.mubr.msk.bf16.gmra.mrb[20].mxu0 %vm737_vm3, %v5271_v31 }
 0x13d   : > { %4103 = vmatprep.mubr.msk.bf16.mxu1 %vm737_vm3, %v5758_v12  ;;  %4239 = vmatprep.mubr.msk.bf16.mxu0 %vm737_vm3, %v5307_v44 }
 0x144   : > { %4104 = vmatmul.mubr.msk.bf16.gmra.mrb[24].mxu1 %vm737_vm3, %v5137_v30  ;;  %4240 = vmatmul.mubr.msk.bf16.gmra.mrb[24].mxu0 %vm737_vm3, %v5317_v1 }
 0x145   : > { %4107 = vmatprep.mubr.msk.bf16.mxu1 %vm737_vm3, %v5164_v63  ;;  %4243 = vmatprep.mubr.msk.bf16.mxu0 %vm737_vm3, %v5336_v19 }
 0x14c   : > { %4108 = vmatmul.mubr.msk.bf16.gmra.mrb[28].mxu1 %vm737_vm3, %v5342_v16  ;;  %4244 = vmatmul.mubr.msk.bf16.gmra.mrb[28].mxu0 %vm737_vm3, %v3608_v22 }
 0x1c7   : > { %v4047_v30 = vpop.f32.mrb[0].mxu1 }
 0x1c8   : > { %v1715_v57 = vpop.f32.mrb[1].mxu1 }
 0x1c9   : > { %v4048_v62 = vpop.f32.mrb[2].mxu1 }
 0x1ca   : > { %v1718_v5 = vpop.f32.mrb[3].mxu1 }
 0x1cf   : > { %v4051_v63 = vpop.f32.mrb[4].mxu1 }
 0x1d0   : > { %v1731_v49 = vpop.f32.mrb[5].mxu1 }
 0x1d1   : > { %v4052_v54 = vpop.f32.mrb[6].mxu1 }
 0x1d2   : > { %v1734_v36 = vpop.f32.mrb[7].mxu1 }
 0x1d7   : > { %v4055_v45 = vpop.f32.mrb[8].mxu1 }
 0x1d8   : > { %v5584_v31 = vpop.f32.mrb[9].mxu1 }
 0x1d9   : > { %v5586_v26 = vpop.f32.mrb[10].mxu1 }
 0x1da   : > { %v5588_v29 = vpop.f32.mrb[11].mxu1 }
 0x1df   : > { %v5590_v44 = vpop.f32.mrb[12].mxu1 }
 0x1e0   : > { %v5592_v8 = vpop.f32.mrb[13].mxu1 }
 0x1e1   : > { %v5594_v1 = vpop.f32.mrb[14].mxu1 }
 0x1e2   : > { %v5596_v40 = vpop.f32.mrb[15].mxu1 }
 0x1e7   : > { %v4217_v19 = vpop.f32.mrb[0].mxu0 }
 0x1e8   : > { %v4249_v16 = vadd.f32 %v4217_v19, %v4047_v30  ;;  %v2801_v3 = vpop.f32.mrb[1].mxu0 }
 0x1e9   : > { %v4250_v4 = vadd.f32 %v2801_v3, %v1715_v57  ;;  %v4218_v11 = vpop.f32.mrb[2].mxu0 }
 0x1ea   : > { %v4251_v21 = vadd.f32 %v4218_v11, %v4048_v62  ;;  %v2804_v13 = vpop.f32.mrb[3].mxu0  ;;  %v2969_v10 = vadd.f32 %v4249_v16, %v5601_v52 }
 0x1eb   : > { %v2967_v24 = vadd.f32 %v4250_v4, %v5601_v52  ;;  %v4252_v9 = vadd.f32 %v2804_v13, %v1718_v5 }
 0x1ec   : > { %v2970_v51 = vadd.f32 %v4251_v21, %v5601_v52  ;;  %v3198_v14 = vmul.f32 %v2969_v10, %v2969_v10 }
 0x1ed   : > { %v2968_v33 = vadd.f32 %v4252_v9, %v5601_v52  ;;  %v3196_v58 = vmul.f32 %v2967_v24, %v2967_v24 }
 0x1ee   : > { %v3701_v39 = vpack.c.bf16 %v2970_v51, %v2969_v10  ;;  %v3199_v47 = vmul.f32 %v2970_v51, %v2970_v51 }
 0x1ef   : > { %v3696_v42 = vpack.c.bf16 %v2968_v33, %v2967_v24  ;;  %v3159_v15 = vadd.f32 %v2968_v33, %v2967_v24  ;;  %v3197_v27 = vmul.f32 %v2968_v33, %v2968_v33  ;;  %v4221_v6 = vpop.f32.mrb[4].mxu0 }
 0x1f0   : > { %3773 = vst [vmem:[%s5610_s26 + $0x8] sm:$0xff] %v3701_v39   ;;  %v4253_v7 = vadd.f32 %v4221_v6, %v4051_v63  ;;  %v2817_v60 = vpop.f32.mrb[5].mxu0 }
 0x1f1   : > { %3697 = vst [vmem:[%s5610_s26] sm:$0xff] %v3696_v42   ;;  %v3160_v28 = vadd.f32 %v3159_v15, %v2969_v10  ;;  %v3228_v25 = vadd.f32 %v3197_v27, %v3196_v58  ;;  %v4254_v38 = vadd.f32 %v2817_v60, %v1731_v49  ;;  %v4222_v46 = vpop.f32.mrb[6].mxu0 }
 0x1f2   : > { %v4255_v32 = vadd.f32 %v4222_v46, %v4052_v54  ;;  %v2820_v18 = vpop.f32.mrb[7].mxu0  ;;  %v2973_v59 = vadd.f32 %v4253_v7, %v5601_v52 }
 0x1f3   : > { %v3229_v43 = vadd.f32 %v3228_v25, %v3198_v14  ;;  %v2971_v55 = vadd.f32 %v4254_v38, %v5601_v52  ;;  %v3161_v12 = vadd.f32 %v3160_v28, %v2970_v51  ;;  %v4256_v23 = vadd.f32 %v2820_v18, %v1734_v36 }
 0x1f4   : > { %v2974_v35 = vadd.f32 %v4255_v32, %v5601_v52  ;;  %v3202_v22 = vmul.f32 %v2973_v59, %v2973_v59 }
 0x1f5   : > { %v3162_v48 = vadd.f32 %v3161_v12, %v2971_v55  ;;  %v3200_v2 = vmul.f32 %v2971_v55, %v2971_v55  ;;  %v3230_v61 = vadd.f32 %v3229_v43, %v3199_v47  ;;  %v2972_v56 = vadd.f32 %v4256_v23, %v5601_v52 }
 0x1f6   : > { %v3711_v53 = vpack.c.bf16 %v2974_v35, %v2973_v59  ;;  %v3203_v63 = vmul.f32 %v2974_v35, %v2974_v35 }
 0x1f7   : > { %v3231_v17 = vadd.f32 %v3230_v61, %v3200_v2  ;;  %v3706_v34 = vpack.c.bf16 %v2972_v56, %v2971_v55  ;;  %v3163_v37 = vadd.f32 %v3162_v48, %v2972_v56  ;;  %v3201_v41 = vmul.f32 %v2972_v56, %v2972_v56  ;;  %v4225_v50 = vpop.f32.mrb[8].mxu0 }
 0x1f8   : > { %3775 = vst [vmem:[%s5610_s26 + $0x18] sm:$0xff] %v3711_v53   ;;  %v4257_v20 = vadd.f32 %v4225_v50, %v4055_v45  ;;  %v2833_v0 = vpop.f32.mrb[9].mxu0 }
 0x1f9   : > { %3774 = vst [vmem:[%s5610_s26 + $0x10] sm:$0xff] %v3706_v34   ;;  %v3164_v30 = vadd.f32 %v3163_v37, %v2973_v59  ;;  %v3232_v57 = vadd.f32 %v3231_v17, %v3201_v41  ;;  %v4258_v62 = vadd.f32 %v2833_v0, %v5584_v31  ;;  %v4226_v5 = vpop.f32.mrb[10].mxu0 }
 0x1fa   : > { %v4259_v49 = vadd.f32 %v4226_v5, %v5586_v26  ;;  %v2836_v54 = vpop.f32.mrb[11].mxu0  ;;  %v2977_v45 = vadd.f32 %v4257_v20, %v5601_v52 }
 0x1fb   : > { %v3233_v36 = vadd.f32 %v3232_v57, %v3202_v22  ;;  %v2975_v19 = vadd.f32 %v4258_v62, %v5601_v52  ;;  %v3165_v16 = vadd.f32 %v3164_v30, %v2974_v35  ;;  %v4260_v3 = vadd.f32 %v2836_v54, %v5588_v29 }
 0x1fc   : > { %v2978_v4 = vadd.f32 %v4259_v49, %v5601_v52  ;;  %v3206_v58 = vmul.f32 %v2977_v45, %v2977_v45 }
 0x1fd   : > { %v3166_v11 = vadd.f32 %v3165_v16, %v2975_v19  ;;  %v3204_v21 = vmul.f32 %v2975_v19, %v2975_v19  ;;  %v3234_v31 = vadd.f32 %v3233_v36, %v3203_v63  ;;  %v2976_v13 = vadd.f32 %v4260_v3, %v5601_v52 }
 0x1fe   : > { %v3721_v24 = vpack.c.bf16 %v2978_v4, %v2977_v45  ;;  %v3207_v7 = vmul.f32 %v2978_v4, %v2978_v4 }
 0x1ff   : > { %v3235_v26 = vadd.f32 %v3234_v31, %v3204_v21  ;;  %v3716_v9 = vpack.c.bf16 %v2976_v13, %v2975_v19  ;;  %v3167_v10 = vadd.f32 %v3166_v11, %v2976_v13  ;;  %v3205_v51 = vmul.f32 %v2976_v13, %v2976_v13  ;;  %v4229_v33 = vpop.f32.mrb[12].mxu0 }
 0x200   : > { %3777 = vst [vmem:[%s5610_s26 + $0x28] sm:$0xff] %v3721_v24   ;;  %v4261_v39 = vadd.f32 %v4229_v33, %v5590_v44  ;;  %v2849_v29 = vpop.f32.mrb[13].mxu0 }
 0x201   : > { %3776 = vst [vmem:[%s5610_s26 + $0x20] sm:$0xff] %v3716_v9   ;;  %v3168_v42 = vadd.f32 %v3167_v10, %v2977_v45  ;;  %v3236_v15 = vadd.f32 %v3235_v26, %v3205_v51  ;;  %v4262_v27 = vadd.f32 %v2849_v29, %v5592_v8  ;;  %v4230_v6 = vpop.f32.mrb[14].mxu0 }
 0x202   : > { %v4263_v60 = vadd.f32 %v4230_v6, %v5594_v1  ;;  %v2852_v14 = vpop.f32.mrb[15].mxu0  ;;  %v2981_v44 = vadd.f32 %v4261_v39, %v5601_v52 }
 0x203   : > { %v3237_v28 = vadd.f32 %v3236_v15, %v3206_v58  ;;  %v2979_v25 = vadd.f32 %v4262_v27, %v5601_v52  ;;  %v3169_v38 = vadd.f32 %v3168_v42, %v2978_v4  ;;  %v4264_v46 = vadd.f32 %v2852_v14, %v5596_v40 }
 0x204   : > { %v2982_v47 = vadd.f32 %v4263_v60, %v5601_v52  ;;  %v3210_v56 = vmul.f32 %v2981_v44, %v2981_v44 }
 0x205   : > { %v3170_v32 = vadd.f32 %v3169_v38, %v2979_v25  ;;  %v3208_v18 = vmul.f32 %v2979_v25, %v2979_v25  ;;  %v3238_v8 = vadd.f32 %v3237_v28, %v3207_v7  ;;  %v2980_v43 = vadd.f32 %v4264_v46, %v5601_v52 }
 0x206   : > { %v3731_v55 = vpack.c.bf16 %v2982_v47, %v2981_v44  ;;  %v3211_v50 = vmul.f32 %v2982_v47, %v2982_v47 }
 0x207   : > { %v3239_v1 = vadd.f32 %v3238_v8, %v3208_v18  ;;  %v3726_v12 = vpack.c.bf16 %v2980_v43, %v2979_v25  ;;  %v3171_v23 = vadd.f32 %v3170_v32, %v2980_v43  ;;  %v3209_v59 = vmul.f32 %v2980_v43, %v2980_v43  ;;  %v4097_v35 = vpop.f32.mrb[16].mxu1  ;;  %v4233_v48 = vpop.f32.mrb[16].mxu0 }
 0x208   : > { %3779 = vst [vmem:[%s5610_s26 + $0x38] sm:$0xff] %v3731_v55   ;;  %v4265_v2 = vadd.f32 %v4233_v48, %v4097_v35  ;;  %v2007_v40 = vpop.f32.mrb[17].mxu1  ;;  %v2865_v61 = vpop.f32.mrb[17].mxu0 }
 0x209   : > { %3778 = vst [vmem:[%s5610_s26 + $0x30] sm:$0xff] %v3726_v12   ;;  %v3172_v53 = vadd.f32 %v3171_v23, %v2981_v44  ;;  %v3240_v17 = vadd.f32 %v3239_v1, %v3209_v59  ;;  %v4266_v34 = vadd.f32 %v2865_v61, %v2007_v40  ;;  %v4098_v37 = vpop.f32.mrb[18].mxu1  ;;  %v4234_v41 = vpop.f32.mrb[18].mxu0 }
 0x20a   : > { %v4267_v20 = vadd.f32 %v4234_v41, %v4098_v37  ;;  %v2010_v0 = vpop.f32.mrb[19].mxu1  ;;  %v2868_v22 = vpop.f32.mrb[19].mxu0  ;;  %v2985_v63 = vadd.f32 %v4265_v2, %v5601_v52 }
 0x20b   : > { %v3241_v30 = vadd.f32 %v3240_v17, %v3210_v56  ;;  %v2983_v57 = vadd.f32 %v4266_v34, %v5601_v52  ;;  %v3173_v62 = vadd.f32 %v3172_v53, %v2982_v47  ;;  %v4268_v5 = vadd.f32 %v2868_v22, %v2010_v0 }
 0x20c   : > { %v2986_v49 = vadd.f32 %v4267_v20, %v5601_v52  ;;  %v3214_v10 = vmul.f32 %v2985_v63, %v2985_v63 }
 0x20d   : > { %v3174_v54 = vadd.f32 %v3173_v62, %v2983_v57  ;;  %v3212_v36 = vmul.f32 %v2983_v57, %v2983_v57  ;;  %v3242_v19 = vadd.f32 %v3241_v30, %v3211_v50  ;;  %v2984_v16 = vadd.f32 %v4268_v5, %v5601_v52 }
 0x20e   : > { %v3741_v3 = vpack.c.bf16 %v2986_v49, %v2985_v63  ;;  %v3215_v42 = vmul.f32 %v2986_v49, %v2986_v49 }
 0x20f   : > { %v3243_v45 = vadd.f32 %v3242_v19, %v3212_v36  ;;  %v3736_v4 = vpack.c.bf16 %v2984_v16, %v2983_v57  ;;  %v3175_v11 = vadd.f32 %v3174_v54, %v2984_v16  ;;  %v3213_v21 = vmul.f32 %v2984_v16, %v2984_v16  ;;  %v4101_v31 = vpop.f32.mrb[20].mxu1  ;;  %v4237_v13 = vpop.f32.mrb[20].mxu0 }
 0x210   : > { %3781 = vst [vmem:[%s5610_s26 + $0x48] sm:$0xff] %v3741_v3   ;;  %v4269_v24 = vadd.f32 %v4237_v13, %v4101_v31  ;;  %v2023_v26 = vpop.f32.mrb[21].mxu1  ;;  %v2881_v9 = vpop.f32.mrb[21].mxu0 }
 0x211   : > { %3780 = vst [vmem:[%s5610_s26 + $0x40] sm:$0xff] %v3736_v4   ;;  %v3176_v51 = vadd.f32 %v3175_v11, %v2985_v63  ;;  %v3244_v33 = vadd.f32 %v3243_v45, %v3213_v21  ;;  %v4270_v39 = vadd.f32 %v2881_v9, %v2023_v26  ;;  %v4102_v29 = vpop.f32.mrb[22].mxu1  ;;  %v4238_v58 = vpop.f32.mrb[22].mxu0 }
 0x212   : > { %v4271_v15 = vadd.f32 %v4238_v58, %v4102_v29  ;;  %v2026_v27 = vpop.f32.mrb[23].mxu1  ;;  %v2884_v6 = vpop.f32.mrb[23].mxu0  ;;  %v2989_v25 = vadd.f32 %v4269_v24, %v5601_v52 }
 0x213   : > { %v3245_v7 = vadd.f32 %v3244_v33, %v3214_v10  ;;  %v2987_v60 = vadd.f32 %v4270_v39, %v5601_v52  ;;  %v3177_v14 = vadd.f32 %v3176_v51, %v2986_v49  ;;  %v4272_v28 = vadd.f32 %v2884_v6, %v2026_v27 }
 0x214   : > { %v2990_v38 = vadd.f32 %v4271_v15, %v5601_v52  ;;  %v3218_v2 = vmul.f32 %v2989_v25, %v2989_v25 }
 0x215   : > { %v3178_v46 = vadd.f32 %v3177_v14, %v2987_v60  ;;  %v3216_v44 = vmul.f32 %v2987_v60, %v2987_v60  ;;  %v3246_v47 = vadd.f32 %v3245_v7, %v3215_v42  ;;  %v2988_v32 = vadd.f32 %v4272_v28, %v5601_v52 }
 0x216   : > { %v3751_v18 = vpack.c.bf16 %v2990_v38, %v2989_v25  ;;  %v3219_v34 = vmul.f32 %v2990_v38, %v2990_v38 }
 0x217   : > { %v3247_v8 = vadd.f32 %v3246_v47, %v3216_v44  ;;  %v3746_v43 = vpack.c.bf16 %v2988_v32, %v2987_v60  ;;  %v3179_v55 = vadd.f32 %v3178_v46, %v2988_v32  ;;  %v3217_v1 = vmul.f32 %v2988_v32, %v2988_v32  ;;  %v4105_v12 = vpop.f32.mrb[24].mxu1  ;;  %v4241_v23 = vpop.f32.mrb[24].mxu0 }
 0x218   : > { %3783 = vst [vmem:[%s5610_s26 + $0x58] sm:$0xff] %v3751_v18   ;;  %v4273_v59 = vadd.f32 %v4241_v23, %v4105_v12  ;;  %v2039_v35 = vpop.f32.mrb[25].mxu1  ;;  %v2897_v48 = vpop.f32.mrb[25].mxu0 }
 0x219   : > { %3782 = vst [vmem:[%s5610_s26 + $0x50] sm:$0xff] %v3746_v43   ;;  %v3180_v40 = vadd.f32 %v3179_v55, %v2989_v25  ;;  %v3248_v61 = vadd.f32 %v3247_v8, %v3217_v1  ;;  %v4274_v56 = vadd.f32 %v2897_v48, %v2039_v35  ;;  %v4106_v53 = vpop.f32.mrb[26].mxu1  ;;  %v4242_v17 = vpop.f32.mrb[26].mxu0 }
 0x21a   : > { %v4275_v37 = vadd.f32 %v4242_v17, %v4106_v53  ;;  %v2042_v41 = vpop.f32.mrb[27].mxu1  ;;  %v2900_v50 = vpop.f32.mrb[27].mxu0  ;;  %v2993_v57 = vadd.f32 %v4273_v59, %v5601_v52 }
 0x21b   : > { %v3249_v20 = vadd.f32 %v3248_v61, %v3218_v2  ;;  %v2991_v0 = vadd.f32 %v4274_v56, %v5601_v52  ;;  %v3181_v22 = vadd.f32 %v3180_v40, %v2990_v38  ;;  %v4276_v30 = vadd.f32 %v2900_v50, %v2042_v41 }
 0x21c   : > { %v2994_v62 = vadd.f32 %v4275_v37, %v5601_v52  ;;  %v3222_v24 = vmul.f32 %v2993_v57, %v2993_v57 }
 0x21d   : > { %v3182_v5 = vadd.f32 %v3181_v22, %v2991_v0  ;;  %v3220_v63 = vmul.f32 %v2991_v0, %v2991_v0  ;;  %v3250_v49 = vadd.f32 %v3249_v20, %v3219_v34  ;;  %v2992_v54 = vadd.f32 %v4276_v30, %v5601_v52 }
 0x21e   : > { %v3761_v36 = vpack.c.bf16 %v2994_v62, %v2993_v57  ;;  %v3223_v39 = vmul.f32 %v2994_v62, %v2994_v62 }
 0x21f   : > { %v3251_v19 = vadd.f32 %v3250_v49, %v3220_v63  ;;  %v3756_v16 = vpack.c.bf16 %v2992_v54, %v2991_v0  ;;  %v3183_v3 = vadd.f32 %v3182_v5, %v2992_v54  ;;  %v3221_v45 = vmul.f32 %v2992_v54, %v2992_v54  ;;  %v4109_v4 = vpop.f32.mrb[28].mxu1  ;;  %v4245_v11 = vpop.f32.mrb[28].mxu0 }
 0x220   : > { %3785 = vst [vmem:[%s5610_s26 + $0x68] sm:$0xff] %v3761_v36   ;;  %v4277_v21 = vadd.f32 %v4245_v11, %v4109_v4  ;;  %v2055_v31 = vpop.f32.mrb[29].mxu1  ;;  %v2913_v13 = vpop.f32.mrb[29].mxu0 }
 0x221   : > { %3784 = vst [vmem:[%s5610_s26 + $0x60] sm:$0xff] %v3756_v16   ;;  %v3184_v26 = vadd.f32 %v3183_v3, %v2993_v57  ;;  %v3252_v9 = vadd.f32 %v3251_v19, %v3221_v45  ;;  %v4278_v10 = vadd.f32 %v2913_v13, %v2055_v31  ;;  %v4110_v51 = vpop.f32.mrb[30].mxu1  ;;  %v4246_v33 = vpop.f32.mrb[30].mxu0 }
 0x222   : > { %v4279_v29 = vadd.f32 %v4246_v33, %v4110_v51  ;;  %v2058_v58 = vpop.f32.mrb[31].mxu1  ;;  %v2916_v42 = vpop.f32.mrb[31].mxu0  ;;  %v2997_v60 = vadd.f32 %v4277_v21, %v5601_v52 }
 0x223   : > { %v3253_v15 = vadd.f32 %v3252_v9, %v3222_v24  ;;  %v2995_v27 = vadd.f32 %v4278_v10, %v5601_v52  ;;  %v3185_v6 = vadd.f32 %v3184_v26, %v2994_v62  ;;  %v4280_v7 = vadd.f32 %v2916_v42, %v2058_v58 }
 0x224   : > { %v2998_v14 = vadd.f32 %v4279_v29, %v5601_v52  ;;  %v3226_v43 = vmul.f32 %v2997_v60, %v2997_v60 }
 0x225   : > { %v3186_v28 = vadd.f32 %v3185_v6, %v2995_v27  ;;  %v3224_v25 = vmul.f32 %v2995_v27, %v2995_v27  ;;  %v3254_v38 = vadd.f32 %v3253_v15, %v3223_v39  ;;  %v2996_v46 = vadd.f32 %v4280_v7, %v5601_v52 }
 0x226   : > { %v3771_v44 = vpack.c.bf16 %v2998_v14, %v2997_v60  ;;  %v3227_v12 = vmul.f32 %v2998_v14, %v2998_v14 }
 0x227   : > { %v3255_v47 = vadd.f32 %v3254_v38, %v3224_v25  ;;  %v3766_v32 = vpack.c.bf16 %v2996_v46, %v2995_v27  ;;  %v3187_v18 = vadd.f32 %v3186_v28, %v2996_v46  ;;  %v3225_v8 = vmul.f32 %v2996_v46, %v2996_v46 }
 0x228   : > { %3787 = vst [vmem:[%s5610_s26 + $0x78] sm:$0xff] %v3771_v44  }
 0x229   : > { %3786 = vst [vmem:[%s5610_s26 + $0x70] sm:$0xff] %v3766_v32   ;;  %v3188_v55 = vadd.f32 %v3187_v18, %v2997_v60  ;;  %v3256_v1 = vadd.f32 %v3255_v47, %v3225_v8 }
 0x22b   : > { %v3189_v23 = vadd.f32 %v3188_v55, %v2998_v14  ;;  %v3257_v59 = vadd.f32 %v3256_v1, %v3226_v43 }
 0x22d   : > { %v3190_v35 = vrot.slane %v3189_v23, 4  ;;  %v3258_v48 = vadd.f32 %v3257_v59, %v3227_v12 }
 0x22f   : > { %v3191_v2 = vadd.f32 %v3190_v35, %v3189_v23  ;;  %v3259_v40 = vrot.slane %v3258_v48, 4 }
 0x231   : > { %v3192_v61 = vrot.slane %v3191_v2, 2  ;;  %v3260_v52 = vadd.f32 %v3259_v40, %v3258_v48 }
 0x233   : > { %v3193_v56 = vadd.f32 %v3192_v61, %v3191_v2  ;;  %v3261_v53 = vrot.slane %v3260_v52, 2 }
 0x235   : > { %v3194_v17 = vrot.slane %v3193_v56, 1  ;;  %v3262_v34 = vadd.f32 %v3261_v53, %v3260_v52 }
 0x237   : > { %v3263_v37 = vrot.slane %v3262_v34, 1  ;;  %v3195_v41 = vadd.f32 %v3194_v17, %v3193_v56 }
 0x239   : > { %v3264_v50 = vadd.f32 %v3263_v37, %v3262_v34 }
 0x23b   : > { %v3266_v20 = vsel %vm3265_vm8, %v3195_v41, %v3264_v50 }
 0x23c   : > { %3267 = vst [vmem:[%s239_s30] sm:$0x3] %v3266_v20 }
 0x23d PF: > { %s15_s17 = sadd.s32 1, %s4584_s17   ;;  %s5759_s15 = smov %s4580_s16 }
 0x23e   : > { %p12_p5 = scmp.ge.s32.totalorder %s15_s17, 4   ;;  %s5760_s16 = smov %s5762_s18 }
 0x240   :  { %14 = sbr.rel (!%p12_p5) target bundleno = 2 (0x2), region = 83 }

</bundles_post_ra>
